<compile_context>
chip_gen: v6e
topology: v6e:2x2x1
jax: 0.10.0
libtpu: 0.0.40
codegen_flags: <defaults>
</compile_context>

<pallas_src>
import functools
import math

import jax
import jax.numpy as jnp
import numpy as np
from jax.experimental import pallas as pl
from jax.experimental.pallas import tpu as pltpu

COORDINATE_SCALE = 10.0
TWO_PI = 2.0 * 3.1416                 # matches the constant in the PyTorch module
LOG_TWO_PI = math.log(TWO_PI)
EPS = 1e-6                            # log / reciprocal guard; << 2e-3 tolerance


def _class_capsule_kernel(beta_v_ref, beta_a_ref, act_ref, vec_ref,
                          w_ref, b_ref, out_ref, votes_ref, *,
                          in_channel, in_dim, classes, out_dim, routing, lamda):
    C = classes
    Bt = act_ref.shape[0]
    N = act_ref.shape[-1]

    act = act_ref[...]                              # (Bt, ic, 1, N)  activations
    vec = vec_ref[...]                              # (Bt, ic, d, N)  (coord already added)

    # Grouped 1x1 conv == per-group matmul with K = in_dim (tiny): unrolled
    # broadcast multiply-adds on the VPU.  Flat vote row o*C + c -> (class c,
    # pose dim o).
    w = w_ref[...]                                  # (ic, out_dim*C, in_dim)
    acc = w[:, :, 0:1] * vec[:, :, 0:1, :]
    for d in range(1, in_dim):
        acc = acc + w[:, :, d:d + 1] * vec[:, :, d:d + 1, :]
    # Stage votes through VMEM scratch; per-o slices are re-loaded below so the
    # full tensor is not pinned in vregs across the unrolled loops.
    votes_ref[...] = acc + b_ref[...]               # (Bt, ic, out_dim*C, N)

    beta_v = beta_v_ref[...]                        # (1, C, 1)
    beta_a = beta_a_ref[...]                        # (1, C, 1)

    # Hoisted sublane broadcast (JAX does not CSE broadcast_in_dim).
    act_b = jnp.broadcast_to(act, (Bt, in_channel, C, N))

    inv_C = 1.0 / classes
    R = None
    a_hat = None

    for it in range(routing):
        last = it == routing - 1

        if it == 0:
            # R is uniform 1/classes; the factor cancels in the mean/variance
            # (numerator and denominator both carry it), so skip the full
            # (Bt,ic,C,N) materialize + multiply and only scale the tiny
            # cost-term sum_r below.
            r_hat = act_b
            r_scale = inv_C
        else:
            r_hat = R * act_b
            r_scale = 1.0

        # Lane reduce first (XLU), then the cheap in_channel tile add: keeps
        # the VALU (the saturating slot) free of extra full-width adds.
        sum_r = jnp.sum(jnp.sum(r_hat, axis=3, keepdims=True),
                        axis=1, keepdims=True) + EPS                 # (Bt,1,C,1)
        # Single-vreg reciprocal: exact costs nothing, keeps stats tight.
        inv_sum_r = pl.reciprocal(sum_r, approx=False)

        log_sig_sum = jnp.zeros((Bt, 1, C, 1), jnp.float32)
        e_acc = None if last else jnp.zeros((Bt, in_channel, C, N), jnp.float32)

        for o in range(out_dim):
            v_o = votes_ref[:, :, o * C:(o + 1) * C, :]              # (Bt,ic,C,N)
            rv = r_hat * v_o
            wsum = jnp.sum(jnp.sum(rv, axis=3, keepdims=True),
                           axis=1, keepdims=True)                    # (Bt,1,C,1)
            u_o = wsum * inv_sum_r                                   # weighted mean
            # Weighted variance from moments: E[v^2] - E[v]^2.  On the last
            # iteration this eliminates the diff / diff^2 / r_hat*diff^2 passes.
            ssum2 = jnp.sum(jnp.sum(rv * v_o, axis=3, keepdims=True),
                            axis=1, keepdims=True)
            sig_o = ssum2 * inv_sum_r - u_o * u_o + EPS              # (Bt,1,C,1)
            log_sig_sum = log_sig_sum + jnp.log(sig_o)
            if not last:
                diff = v_o - u_o
                # reciprocal of a single-vreg tensor; the multiply is the
                # full-width part.
                e_acc = e_acc + (diff * diff) * pl.reciprocal(2.0 * sig_o,
                                                              approx=False)

        true_sum_r = sum_r * r_scale if r_scale != 1.0 else sum_r
        cost_sum = (log_sig_sum + float(out_dim) * beta_v) * true_sum_r
        a_hat = jax.nn.sigmoid(lamda * (beta_a - cost_sum))          # (Bt,1,C,1)

        if not last:
            # a_hat * p_c in one exp:
            #   a_hat * exp(-(e_acc + 0.5*sum_o log(2*pi*sigma_o)))
            # = exp(log a_hat - 0.5*log_sp - e_acc), tiny terms combined first.
            log_sp = log_sig_sum + float(out_dim) * LOG_TWO_PI       # (Bt,1,C,1)
            t = jnp.log(a_hat) - 0.5 * log_sp                        # (Bt,1,C,1)
            ap = jnp.exp(t - e_acc)                                  # (Bt,ic,C,N)
            denom = jnp.sum(ap, axis=2, keepdims=True)               # (Bt,ic,1,N)
            # Full-lane-width reciprocal: approx=True -> EUP vrcp, no Newton
            # refinement (error ~2^-12, renormalized away in R).
            R = ap * pl.reciprocal(denom, approx=True)

    out_ref[...] = a_hat                                             # one store


def _pick_batch_tile(B, in_channel, in_dim, classes, out_dim, N,
                     vmem_budget_bytes=8 << 20):
    """Largest Bt dividing B that keeps >=2 grid steps (so dimension_semantics
    ('parallel',) can still shard across the two TensorCores on v7x) and stays
    inside a conservative per-step VMEM budget."""
    if B <= 1:
        return 1
    M = out_dim * classes
    per_batch = 4 * (in_channel * M * N                      # votes scratch
                     + 6 * in_channel * classes * N          # act_b/R/e_acc/ap/temps
                     + 2 * in_channel * (1 + in_dim) * N)    # double-buffered inputs
    best = 1
    for bt in range(1, B + 1):
        if B % bt:
            continue
        if B // bt < 2:
            break
        if bt * per_batch > vmem_budget_bytes:
            break
        best = bt
    return best


def class_capsule_forward(x, W4, bias4, beta_v, beta_a, *, in_channel, in_dim,
                          classes, out_dim, routing, lamda):
    assert routing >= 1
    B, Cch, H, Wd = x.shape
    assert Cch == in_channel * (1 + in_dim)
    N = H * Wd  # lane axis; ideally a multiple of 128 (demo: 16*16 = 256)

    x_r = x.reshape(B, in_channel, 1 + in_dim, H, Wd).astype(jnp.float32)
    act = x_r[:, :, 0].reshape(B, in_channel, 1, N)             # activations

    # Coordinate addition in the wrapper (batch-invariant; fused by XLA), so
    # coord is no longer a kernel input / DMA / in-kernel add.
    cx = jnp.arange(H, dtype=jnp.float32) / COORDINATE_SCALE
    cy = jnp.arange(Wd, dtype=jnp.float32) / COORDINATE_SCALE
    vec = x_r[:, :, 1:]                                         # (B, ic, in_dim, H, W)
    vec = vec.at[:, :, 0].add(cx[None, None, :, None])
    vec = vec.at[:, :, 1].add(cy[None, None, None, :])
    vec = vec.reshape(B, in_channel, in_dim, N)

    # Conv params: W4 is (ic, cls, od, in_dim).  Reorder rows o-major /
    # class-minor so each out_dim slice of the flat vote tensor is a
    # sublane-aligned (classes, N) tile.
    M = out_dim * classes
    Wk = jnp.transpose(W4, (0, 2, 1, 3)).reshape(in_channel, M, in_dim).astype(jnp.float32)
    bk = jnp.transpose(bias4, (0, 2, 1)).reshape(in_channel, M, 1).astype(jnp.float32)
    bv = beta_v.reshape(1, classes, 1).astype(jnp.float32)
    ba = beta_a.reshape(1, classes, 1).astype(jnp.float32)

    Bt = _pick_batch_tile(B, in_channel, in_dim, classes, out_dim, N)
    grid = (B // Bt,)

    kernel = functools.partial(_class_capsule_kernel, in_channel=in_channel,
                               in_dim=in_dim, classes=classes, out_dim=out_dim,
                               routing=routing, lamda=lamda)

    out = pl.pallas_call(
        kernel,
        out_shape=jax.ShapeDtypeStruct((B, 1, classes, 1), jnp.float32),
        grid=grid,
        in_specs=[
            pl.BlockSpec((1, classes, 1), lambda b: (0, 0, 0)),                 # beta_v
            pl.BlockSpec((1, classes, 1), lambda b: (0, 0, 0)),                 # beta_a
            pl.BlockSpec((Bt, in_channel, 1, N), lambda b: (b, 0, 0, 0)),       # act
            pl.BlockSpec((Bt, in_channel, in_dim, N), lambda b: (b, 0, 0, 0)),  # vec
            pl.BlockSpec((in_channel, M, in_dim), lambda b: (0, 0, 0)),         # W
            pl.BlockSpec((in_channel, M, 1), lambda b: (0, 0, 0)),              # bias
        ],
        out_specs=pl.BlockSpec((Bt, 1, classes, 1), lambda b: (b, 0, 0, 0)),
        scratch_shapes=[pltpu.VMEM((Bt, in_channel, M, N), jnp.float32)],       # votes
        compiler_params=pltpu.CompilerParams(dimension_semantics=("parallel",)),
    )(bv, ba, act, vec, Wk, bk)
    return out.reshape(B, classes)


def class_capsule_reference(x, W4, bias4, beta_v, beta_a, *, in_channel, in_dim,
                            classes, out_dim, routing, lamda):
    """Pure-JAX mirror of the PyTorch forward (for verification only)."""
    B, C, H, Wd = x.shape
    x_r = x.reshape(B, in_channel, 1 + in_dim, H, Wd)
    act = x_r[:, :, 0]
    vec = x_r[:, :, 1:]
    cx = jnp.arange(H, dtype=jnp.float32) / COORDINATE_SCALE
    cy = jnp.arange(Wd, dtype=jnp.float32) / COORDINATE_SCALE
    vec = vec.at[:, :, 0].add(cx[None, None, :, None])
    vec = vec.at[:, :, 1].add(cy[None, None, None, :])
    votes = jnp.einsum('gcod,bgdhw->bgcohw', W4, vec,
                       precision=jax.lax.Precision.HIGHEST) \
        + bias4[None, :, :, :, None, None]                      # (B,ic,cls,od,H,W)
    R = jnp.full((B, in_channel, classes, H, Wd), 1.0 / classes, jnp.float32)
    a_hat = None
    for _ in range(routing):
        r_hat = R * act[:, :, None, :, :]
        sum_r = r_hat.sum(axis=(1, 3, 4))                        # (B,cls)
        u = (r_hat[:, :, :, None] * votes).sum(axis=(1, 4, 5)) / sum_r[:, :, None]
        diff = votes - u[:, None, :, :, None, None]
        sig = (r_hat[:, :, :, None] * diff ** 2).sum(axis=(1, 4, 5)) / sum_r[:, :, None]
        cost = (beta_v[None, :, None] + jnp.log(sig)) * sum_r[:, :, None]
        a_hat = jax.nn.sigmoid(lamda * (beta_a[None, :] - cost.sum(axis=2)))
        sp = jnp.ones((B, classes), jnp.float32)
        for dm in range(out_dim):
            sp = 2.0 * 3.1416 * sp * sig[:, :, dm]
        p_c = jnp.exp(-(diff ** 2 / (2.0 * sig[:, None, :, :, None, None])).sum(axis=3)) \
            / jnp.sqrt(sp)[:, None, :, None, None]
        ap = a_hat[:, None, :, None, None] * p_c
        R = ap / ap.sum(axis=2, keepdims=True)
    return a_hat


if __name__ == "__main__":
    B, in_channel, in_dim, classes, out_dim = 2, 4, 4, 8, 4
    H = Wd = 16                                   # N = 256 -> two full lane blocks
    routing, lamda = 2, 0.01

    key = jax.random.PRNGKey(0)
    k1, k2, k3, k4, k5, k6 = jax.random.split(key, 6)

    # Activations kept positive (as a capsule layer would produce) so that the
    # EM statistics (log / exp) stay well defined; pose vectors are Gaussian.
    act_in = jax.random.uniform(k1, (B, in_channel, 1, H, Wd), jnp.float32, 0.1, 1.0)
    vec_in = jax.random.normal(k2, (B, in_channel, in_dim, H, Wd), jnp.float32)
    x = jnp.concatenate([act_in, vec_in], axis=2).reshape(
        B, in_channel * (1 + in_dim), H, Wd)                     # NCHW input

    # Deterministic synthetic parameters (shapes match nn.Conv2d grouped 1x1).
    W4 = 0.5 * jax.random.normal(k3, (in_channel, classes, out_dim, in_dim), jnp.float32)
    bias4 = 0.1 * jax.random.normal(k4, (in_channel, classes, out_dim), jnp.float32)
    beta_v = jax.random.normal(k5, (classes,), jnp.float32)
    beta_a = jax.random.normal(k6, (classes,), jnp.float32)

    out = class_capsule_forward(
        x, W4, bias4, beta_v, beta_a,
        in_channel=in_channel, in_dim=in_dim, classes=classes,
        out_dim=out_dim, routing=routing, lamda=lamda)
    out = jax.block_until_ready(out)

    ref = class_capsule_reference(
        x, W4, bias4, beta_v, beta_a,
        in_channel=in_channel, in_dim=in_dim, classes=classes,
        out_dim=out_dim, routing=routing, lamda=lamda)
    ref = jax.block_until_ready(ref)

    np.testing.assert_allclose(np.asarray(out), np.asarray(ref), rtol=2e-3, atol=2e-3)
    print("KERNEL_OK")
</pallas_src>

<mosaic_0001>
module attributes {stable_mosaic.version = 11 : i64} {
  func.func @_class_capsule_kernel(%arg0: i32, %arg1: memref<1x8x1xf32, #tpu.memory_space<vmem>>, %arg2: memref<1x8x1xf32, #tpu.memory_space<vmem>>, %arg3: memref<1x4x1x256xf32, #tpu.memory_space<vmem>>, %arg4: memref<1x4x4x256xf32, #tpu.memory_space<vmem>>, %arg5: memref<4x32x4xf32, #tpu.memory_space<vmem>>, %arg6: memref<4x32x1xf32, #tpu.memory_space<vmem>>, %arg7: memref<1x1x8x1xf32, #tpu.memory_space<vmem>>, %arg8: memref<1x4x32x256xf32, #tpu.memory_space<vmem>>) attributes {dimension_semantics = [#tpu.dimension_semantics<parallel>], iteration_bounds = array<i64: 2>, scalar_prefetch = 0 : i64, scratch_operands = 1 : i64, tpu.core_type = #tpu.core_type<tc>, window_params = [{pipeline_mode = #tpu.pipeline_mode<synchronous>, transform_indices = @transform_0, window_bounds = array<i64: 1, 8, 1>}, {pipeline_mode = #tpu.pipeline_mode<synchronous>, transform_indices = @transform_1, window_bounds = array<i64: 1, 8, 1>}, {transform_indices = @transform_2, window_bounds = array<i64: 1, 4, 1, 256>}, {transform_indices = @transform_3, window_bounds = array<i64: 1, 4, 4, 256>}, {pipeline_mode = #tpu.pipeline_mode<synchronous>, transform_indices = @transform_4, window_bounds = array<i64: 4, 32, 4>}, {pipeline_mode = #tpu.pipeline_mode<synchronous>, transform_indices = @transform_5, window_bounds = array<i64: 4, 32, 1>}, {transform_indices = @transform_6, window_bounds = array<i64: 1, 1, 8, 1>}]} {
    %c0 = arith.constant 0 : index
    %c0_0 = arith.constant 0 : index
    %c0_1 = arith.constant 0 : index
    %c0_2 = arith.constant 0 : index
    %0 = vector.load %arg3[%c0, %c0_0, %c0_1, %c0_2] : memref<1x4x1x256xf32, #tpu.memory_space<vmem>>, vector<1x4x1x256xf32>
    %c0_3 = arith.constant 0 : index
    %c0_4 = arith.constant 0 : index
    %c0_5 = arith.constant 0 : index
    %c0_6 = arith.constant 0 : index
    %1 = vector.load %arg4[%c0_3, %c0_4, %c0_5, %c0_6] : memref<1x4x4x256xf32, #tpu.memory_space<vmem>>, vector<1x4x4x256xf32>
    %c0_7 = arith.constant 0 : index
    %c0_8 = arith.constant 0 : index
    %c0_9 = arith.constant 0 : index
    %2 = vector.load %arg5[%c0_7, %c0_8, %c0_9] : memref<4x32x4xf32, #tpu.memory_space<vmem>>, vector<4x32x4xf32>
    %3 = vector.extract_strided_slice %2 {offsets = [0, 0, 0], sizes = [4, 32, 1], strides = [1, 1, 1]} : vector<4x32x4xf32> to vector<4x32x1xf32>
    %4 = vector.extract_strided_slice %1 {offsets = [0, 0, 0, 0], sizes = [1, 4, 1, 256], strides = [1, 1, 1, 1]} : vector<1x4x4x256xf32> to vector<1x4x1x256xf32>
    %5 = vector.shape_cast %3 : vector<4x32x1xf32> to vector<1x4x32x1xf32>
    %6 = vector.broadcast %5 : vector<1x4x32x1xf32> to vector<1x4x32x256xf32>
    %7 = vector.broadcast %4 : vector<1x4x1x256xf32> to vector<1x4x32x256xf32>
    %8 = arith.mulf %6, %7 : vector<1x4x32x256xf32>
    %9 = vector.extract_strided_slice %2 {offsets = [0, 0, 1], sizes = [4, 32, 1], strides = [1, 1, 1]} : vector<4x32x4xf32> to vector<4x32x1xf32>
    %10 = vector.extract_strided_slice %1 {offsets = [0, 0, 1, 0], sizes = [1, 4, 1, 256], strides = [1, 1, 1, 1]} : vector<1x4x4x256xf32> to vector<1x4x1x256xf32>
    %11 = vector.shape_cast %9 : vector<4x32x1xf32> to vector<1x4x32x1xf32>
    %12 = vector.broadcast %11 : vector<1x4x32x1xf32> to vector<1x4x32x256xf32>
    %13 = vector.broadcast %10 : vector<1x4x1x256xf32> to vector<1x4x32x256xf32>
    %14 = arith.mulf %12, %13 : vector<1x4x32x256xf32>
    %15 = arith.addf %8, %14 : vector<1x4x32x256xf32>
    %16 = vector.extract_strided_slice %2 {offsets = [0, 0, 2], sizes = [4, 32, 1], strides = [1, 1, 1]} : vector<4x32x4xf32> to vector<4x32x1xf32>
    %17 = vector.extract_strided_slice %1 {offsets = [0, 0, 2, 0], sizes = [1, 4, 1, 256], strides = [1, 1, 1, 1]} : vector<1x4x4x256xf32> to vector<1x4x1x256xf32>
    %18 = vector.shape_cast %16 : vector<4x32x1xf32> to vector<1x4x32x1xf32>
    %19 = vector.broadcast %18 : vector<1x4x32x1xf32> to vector<1x4x32x256xf32>
    %20 = vector.broadcast %17 : vector<1x4x1x256xf32> to vector<1x4x32x256xf32>
    %21 = arith.mulf %19, %20 : vector<1x4x32x256xf32>
    %22 = arith.addf %15, %21 : vector<1x4x32x256xf32>
    %23 = vector.extract_strided_slice %2 {offsets = [0, 0, 3], sizes = [4, 32, 1], strides = [1, 1, 1]} : vector<4x32x4xf32> to vector<4x32x1xf32>
    %24 = vector.extract_strided_slice %1 {offsets = [0, 0, 3, 0], sizes = [1, 4, 1, 256], strides = [1, 1, 1, 1]} : vector<1x4x4x256xf32> to vector<1x4x1x256xf32>
    %25 = vector.shape_cast %23 : vector<4x32x1xf32> to vector<1x4x32x1xf32>
    %26 = vector.broadcast %25 : vector<1x4x32x1xf32> to vector<1x4x32x256xf32>
    %27 = vector.broadcast %24 : vector<1x4x1x256xf32> to vector<1x4x32x256xf32>
    %28 = arith.mulf %26, %27 : vector<1x4x32x256xf32>
    %29 = arith.addf %22, %28 : vector<1x4x32x256xf32>
    %c0_10 = arith.constant 0 : index
    %c0_11 = arith.constant 0 : index
    %c0_12 = arith.constant 0 : index
    %30 = vector.load %arg6[%c0_10, %c0_11, %c0_12] : memref<4x32x1xf32, #tpu.memory_space<vmem>>, vector<4x32x1xf32>
    %31 = vector.shape_cast %30 : vector<4x32x1xf32> to vector<1x4x32x1xf32>
    %32 = vector.broadcast %31 : vector<1x4x32x1xf32> to vector<1x4x32x256xf32>
    %33 = arith.addf %29, %32 : vector<1x4x32x256xf32>
    %c0_13 = arith.constant 0 : index
    %c0_14 = arith.constant 0 : index
    %c0_15 = arith.constant 0 : index
    %c0_16 = arith.constant 0 : index
    %34 = vector.load %arg8[%c0_13, %c0_14, %c0_15, %c0_16] : memref<1x4x32x256xf32, #tpu.memory_space<vmem>>, vector<1x4x32x256xf32>
    tpu.vector_store %arg8[%c0_13, %c0_14, %c0_15, %c0_16], %33 {strides = array<i32>} : memref<1x4x32x256xf32, #tpu.memory_space<vmem>>, vector<1x4x32x256xf32>,
    %c0_17 = arith.constant 0 : index
    %c0_18 = arith.constant 0 : index
    %c0_19 = arith.constant 0 : index
    %35 = vector.load %arg1[%c0_17, %c0_18, %c0_19] : memref<1x8x1xf32, #tpu.memory_space<vmem>>, vector<1x8x1xf32>
    %c0_20 = arith.constant 0 : index
    %c0_21 = arith.constant 0 : index
    %c0_22 = arith.constant 0 : index
    %36 = vector.load %arg2[%c0_20, %c0_21, %c0_22] : memref<1x8x1xf32, #tpu.memory_space<vmem>>, vector<1x8x1xf32>
    %37 = vector.shape_cast %0 : vector<1x4x1x256xf32> to vector<1x4x1x256xf32>
    %38 = vector.broadcast %37 : vector<1x4x1x256xf32> to vector<1x4x8x256xf32>
    %cst = arith.constant dense<0.000000e+00> : vector<1x4x8xf32>
    %39 = vector.multi_reduction <add>, %38, %cst [3] : vector<1x4x8x256xf32> to vector<1x4x8xf32>
    %40 = vector.shape_cast %39 : vector<1x4x8xf32> to vector<1x4x8x1xf32>
    %cst_23 = arith.constant dense<0.000000e+00> : vector<1x8x1xf32>
    %41 = vector.multi_reduction <add>, %40, %cst_23 [1] : vector<1x4x8x1xf32> to vector<1x8x1xf32>
    %42 = vector.shape_cast %41 : vector<1x8x1xf32> to vector<1x1x8x1xf32>
    %cst_24 = arith.constant 9.99999997E-7 : f32
    %43 = vector.broadcast %cst_24 : f32 to vector<1x1x8x1xf32>
    %44 = arith.addf %42, %43 : vector<1x1x8x1xf32>
    %45 = tpu.reciprocal %44 : vector<1x1x8x1xf32> -> vector<1x1x8x1xf32>
    %cst_25 = arith.constant 0.000000e+00 : f32
    %46 = vector.broadcast %cst_25 : f32 to vector<1x1x8x1xf32>
    %cst_26 = arith.constant 0.000000e+00 : f32
    %47 = vector.broadcast %cst_26 : f32 to vector<1x4x8x256xf32>
    %c0_27 = arith.constant 0 : index
    %c0_28 = arith.constant 0 : index
    %c0_29 = arith.constant 0 : index
    %c0_30 = arith.constant 0 : index
    %48 = vector.load %arg8[%c0_27, %c0_28, %c0_29, %c0_30] : memref<1x4x32x256xf32, #tpu.memory_space<vmem>>, vector<1x4x8x256xf32>
    %49 = arith.mulf %38, %48 : vector<1x4x8x256xf32>
    %cst_31 = arith.constant dense<0.000000e+00> : vector<1x4x8xf32>
    %50 = vector.multi_reduction <add>, %49, %cst_31 [3] : vector<1x4x8x256xf32> to vector<1x4x8xf32>
    %51 = vector.shape_cast %50 : vector<1x4x8xf32> to vector<1x4x8x1xf32>
    %cst_32 = arith.constant dense<0.000000e+00> : vector<1x8x1xf32>
    %52 = vector.multi_reduction <add>, %51, %cst_32 [1] : vector<1x4x8x1xf32> to vector<1x8x1xf32>
    %53 = vector.shape_cast %52 : vector<1x8x1xf32> to vector<1x1x8x1xf32>
    %54 = arith.mulf %53, %45 : vector<1x1x8x1xf32>
    %55 = arith.mulf %49, %48 : vector<1x4x8x256xf32>
    %cst_33 = arith.constant dense<0.000000e+00> : vector<1x4x8xf32>
    %56 = vector.multi_reduction <add>, %55, %cst_33 [3] : vector<1x4x8x256xf32> to vector<1x4x8xf32>
    %57 = vector.shape_cast %56 : vector<1x4x8xf32> to vector<1x4x8x1xf32>
    %cst_34 = arith.constant dense<0.000000e+00> : vector<1x8x1xf32>
    %58 = vector.multi_reduction <add>, %57, %cst_34 [1] : vector<1x4x8x1xf32> to vector<1x8x1xf32>
    %59 = vector.shape_cast %58 : vector<1x8x1xf32> to vector<1x1x8x1xf32>
    %60 = arith.mulf %59, %45 : vector<1x1x8x1xf32>
    %61 = arith.mulf %54, %54 : vector<1x1x8x1xf32>
    %62 = arith.subf %60, %61 : vector<1x1x8x1xf32>
    %cst_35 = arith.constant 9.99999997E-7 : f32
    %63 = vector.broadcast %cst_35 : f32 to vector<1x1x8x1xf32>
    %64 = arith.addf %62, %63 : vector<1x1x8x1xf32>
    %65 = math.log %64 : vector<1x1x8x1xf32>
    %66 = arith.addf %46, %65 : vector<1x1x8x1xf32>
    %67 = vector.broadcast %54 : vector<1x1x8x1xf32> to vector<1x4x8x256xf32>
    %68 = arith.subf %48, %67 : vector<1x4x8x256xf32>
    %69 = arith.mulf %68, %68 : vector<1x4x8x256xf32>
    %cst_36 = arith.constant 2.000000e+00 : f32
    %70 = vector.broadcast %cst_36 : f32 to vector<1x1x8x1xf32>
    %71 = arith.mulf %70, %64 : vector<1x1x8x1xf32>
    %72 = tpu.reciprocal %71 : vector<1x1x8x1xf32> -> vector<1x1x8x1xf32>
    %73 = vector.broadcast %72 : vector<1x1x8x1xf32> to vector<1x4x8x256xf32>
    %74 = arith.mulf %69, %73 : vector<1x4x8x256xf32>
    %75 = arith.addf %47, %74 : vector<1x4x8x256xf32>
    %c0_37 = arith.constant 0 : index
    %c0_38 = arith.constant 0 : index
    %c8 = arith.constant 8 : index
    %c0_39 = arith.constant 0 : index
    %76 = vector.load %arg8[%c0_37, %c0_38, %c8, %c0_39] : memref<1x4x32x256xf32, #tpu.memory_space<vmem>>, vector<1x4x8x256xf32>
    %77 = arith.mulf %38, %76 : vector<1x4x8x256xf32>
    %cst_40 = arith.constant dense<0.000000e+00> : vector<1x4x8xf32>
    %78 = vector.multi_reduction <add>, %77, %cst_40 [3] : vector<1x4x8x256xf32> to vector<1x4x8xf32>
    %79 = vector.shape_cast %78 : vector<1x4x8xf32> to vector<1x4x8x1xf32>
    %cst_41 = arith.constant dense<0.000000e+00> : vector<1x8x1xf32>
    %80 = vector.multi_reduction <add>, %79, %cst_41 [1] : vector<1x4x8x1xf32> to vector<1x8x1xf32>
    %81 = vector.shape_cast %80 : vector<1x8x1xf32> to vector<1x1x8x1xf32>
    %82 = arith.mulf %81, %45 : vector<1x1x8x1xf32>
    %83 = arith.mulf %77, %76 : vector<1x4x8x256xf32>
    %cst_42 = arith.constant dense<0.000000e+00> : vector<1x4x8xf32>
    %84 = vector.multi_reduction <add>, %83, %cst_42 [3] : vector<1x4x8x256xf32> to vector<1x4x8xf32>
    %85 = vector.shape_cast %84 : vector<1x4x8xf32> to vector<1x4x8x1xf32>
    %cst_43 = arith.constant dense<0.000000e+00> : vector<1x8x1xf32>
    %86 = vector.multi_reduction <add>, %85, %cst_43 [1] : vector<1x4x8x1xf32> to vector<1x8x1xf32>
    %87 = vector.shape_cast %86 : vector<1x8x1xf32> to vector<1x1x8x1xf32>
    %88 = arith.mulf %87, %45 : vector<1x1x8x1xf32>
    %89 = arith.mulf %82, %82 : vector<1x1x8x1xf32>
    %90 = arith.subf %88, %89 : vector<1x1x8x1xf32>
    %cst_44 = arith.constant 9.99999997E-7 : f32
    %91 = vector.broadcast %cst_44 : f32 to vector<1x1x8x1xf32>
    %92 = arith.addf %90, %91 : vector<1x1x8x1xf32>
    %93 = math.log %92 : vector<1x1x8x1xf32>
    %94 = arith.addf %66, %93 : vector<1x1x8x1xf32>
    %95 = vector.broadcast %82 : vector<1x1x8x1xf32> to vector<1x4x8x256xf32>
    %96 = arith.subf %76, %95 : vector<1x4x8x256xf32>
    %97 = arith.mulf %96, %96 : vector<1x4x8x256xf32>
    %cst_45 = arith.constant 2.000000e+00 : f32
    %98 = vector.broadcast %cst_45 : f32 to vector<1x1x8x1xf32>
    %99 = arith.mulf %98, %92 : vector<1x1x8x1xf32>
    %100 = tpu.reciprocal %99 : vector<1x1x8x1xf32> -> vector<1x1x8x1xf32>
    %101 = vector.broadcast %100 : vector<1x1x8x1xf32> to vector<1x4x8x256xf32>
    %102 = arith.mulf %97, %101 : vector<1x4x8x256xf32>
    %103 = arith.addf %75, %102 : vector<1x4x8x256xf32>
    %c0_46 = arith.constant 0 : index
    %c0_47 = arith.constant 0 : index
    %c16 = arith.constant 16 : index
    %c0_48 = arith.constant 0 : index
    %104 = vector.load %arg8[%c0_46, %c0_47, %c16, %c0_48] : memref<1x4x32x256xf32, #tpu.memory_space<vmem>>, vector<1x4x8x256xf32>
    %105 = arith.mulf %38, %104 : vector<1x4x8x256xf32>
    %cst_49 = arith.constant dense<0.000000e+00> : vector<1x4x8xf32>
    %106 = vector.multi_reduction <add>, %105, %cst_49 [3] : vector<1x4x8x256xf32> to vector<1x4x8xf32>
    %107 = vector.shape_cast %106 : vector<1x4x8xf32> to vector<1x4x8x1xf32>
    %cst_50 = arith.constant dense<0.000000e+00> : vector<1x8x1xf32>
    %108 = vector.multi_reduction <add>, %107, %cst_50 [1] : vector<1x4x8x1xf32> to vector<1x8x1xf32>
    %109 = vector.shape_cast %108 : vector<1x8x1xf32> to vector<1x1x8x1xf32>
    %110 = arith.mulf %109, %45 : vector<1x1x8x1xf32>
    %111 = arith.mulf %105, %104 : vector<1x4x8x256xf32>
    %cst_51 = arith.constant dense<0.000000e+00> : vector<1x4x8xf32>
    %112 = vector.multi_reduction <add>, %111, %cst_51 [3] : vector<1x4x8x256xf32> to vector<1x4x8xf32>
    %113 = vector.shape_cast %112 : vector<1x4x8xf32> to vector<1x4x8x1xf32>
    %cst_52 = arith.constant dense<0.000000e+00> : vector<1x8x1xf32>
    %114 = vector.multi_reduction <add>, %113, %cst_52 [1] : vector<1x4x8x1xf32> to vector<1x8x1xf32>
    %115 = vector.shape_cast %114 : vector<1x8x1xf32> to vector<1x1x8x1xf32>
    %116 = arith.mulf %115, %45 : vector<1x1x8x1xf32>
    %117 = arith.mulf %110, %110 : vector<1x1x8x1xf32>
    %118 = arith.subf %116, %117 : vector<1x1x8x1xf32>
    %cst_53 = arith.constant 9.99999997E-7 : f32
    %119 = vector.broadcast %cst_53 : f32 to vector<1x1x8x1xf32>
    %120 = arith.addf %118, %119 : vector<1x1x8x1xf32>
    %121 = math.log %120 : vector<1x1x8x1xf32>
    %122 = arith.addf %94, %121 : vector<1x1x8x1xf32>
    %123 = vector.broadcast %110 : vector<1x1x8x1xf32> to vector<1x4x8x256xf32>
    %124 = arith.subf %104, %123 : vector<1x4x8x256xf32>
    %125 = arith.mulf %124, %124 : vector<1x4x8x256xf32>
    %cst_54 = arith.constant 2.000000e+00 : f32
    %126 = vector.broadcast %cst_54 : f32 to vector<1x1x8x1xf32>
    %127 = arith.mulf %126, %120 : vector<1x1x8x1xf32>
    %128 = tpu.reciprocal %127 : vector<1x1x8x1xf32> -> vector<1x1x8x1xf32>
    %129 = vector.broadcast %128 : vector<1x1x8x1xf32> to vector<1x4x8x256xf32>
    %130 = arith.mulf %125, %129 : vector<1x4x8x256xf32>
    %131 = arith.addf %103, %130 : vector<1x4x8x256xf32>
    %c0_55 = arith.constant 0 : index
    %c0_56 = arith.constant 0 : index
    %c24 = arith.constant 24 : index
    %c0_57 = arith.constant 0 : index
    %132 = vector.load %arg8[%c0_55, %c0_56, %c24, %c0_57] : memref<1x4x32x256xf32, #tpu.memory_space<vmem>>, vector<1x4x8x256xf32>
    %133 = arith.mulf %38, %132 : vector<1x4x8x256xf32>
    %cst_58 = arith.constant dense<0.000000e+00> : vector<1x4x8xf32>
    %134 = vector.multi_reduction <add>, %133, %cst_58 [3] : vector<1x4x8x256xf32> to vector<1x4x8xf32>
    %135 = vector.shape_cast %134 : vector<1x4x8xf32> to vector<1x4x8x1xf32>
    %cst_59 = arith.constant dense<0.000000e+00> : vector<1x8x1xf32>
    %136 = vector.multi_reduction <add>, %135, %cst_59 [1] : vector<1x4x8x1xf32> to vector<1x8x1xf32>
    %137 = vector.shape_cast %136 : vector<1x8x1xf32> to vector<1x1x8x1xf32>
    %138 = arith.mulf %137, %45 : vector<1x1x8x1xf32>
    %139 = arith.mulf %133, %132 : vector<1x4x8x256xf32>
    %cst_60 = arith.constant dense<0.000000e+00> : vector<1x4x8xf32>
    %140 = vector.multi_reduction <add>, %139, %cst_60 [3] : vector<1x4x8x256xf32> to vector<1x4x8xf32>
    %141 = vector.shape_cast %140 : vector<1x4x8xf32> to vector<1x4x8x1xf32>
    %cst_61 = arith.constant dense<0.000000e+00> : vector<1x8x1xf32>
    %142 = vector.multi_reduction <add>, %141, %cst_61 [1] : vector<1x4x8x1xf32> to vector<1x8x1xf32>
    %143 = vector.shape_cast %142 : vector<1x8x1xf32> to vector<1x1x8x1xf32>
    %144 = arith.mulf %143, %45 : vector<1x1x8x1xf32>
    %145 = arith.mulf %138, %138 : vector<1x1x8x1xf32>
    %146 = arith.subf %144, %145 : vector<1x1x8x1xf32>
    %cst_62 = arith.constant 9.99999997E-7 : f32
    %147 = vector.broadcast %cst_62 : f32 to vector<1x1x8x1xf32>
    %148 = arith.addf %146, %147 : vector<1x1x8x1xf32>
    %149 = math.log %148 : vector<1x1x8x1xf32>
    %150 = arith.addf %122, %149 : vector<1x1x8x1xf32>
    %151 = vector.broadcast %138 : vector<1x1x8x1xf32> to vector<1x4x8x256xf32>
    %152 = arith.subf %132, %151 : vector<1x4x8x256xf32>
    %153 = arith.mulf %152, %152 : vector<1x4x8x256xf32>
    %cst_63 = arith.constant 2.000000e+00 : f32
    %154 = vector.broadcast %cst_63 : f32 to vector<1x1x8x1xf32>
    %155 = arith.mulf %154, %148 : vector<1x1x8x1xf32>
    %156 = tpu.reciprocal %155 : vector<1x1x8x1xf32> -> vector<1x1x8x1xf32>
    %157 = vector.broadcast %156 : vector<1x1x8x1xf32> to vector<1x4x8x256xf32>
    %158 = arith.mulf %153, %157 : vector<1x4x8x256xf32>
    %159 = arith.addf %131, %158 : vector<1x4x8x256xf32>
    %cst_64 = arith.constant 1.250000e-01 : f32
    %160 = vector.broadcast %cst_64 : f32 to vector<1x1x8x1xf32>
    %161 = arith.mulf %44, %160 : vector<1x1x8x1xf32>
    %cst_65 = arith.constant 4.000000e+00 : f32
    %162 = vector.broadcast %cst_65 : f32 to vector<1x8x1xf32>
    %163 = arith.mulf %162, %35 : vector<1x8x1xf32>
    %164 = vector.shape_cast %163 : vector<1x8x1xf32> to vector<1x1x8x1xf32>
    %165 = arith.addf %150, %164 : vector<1x1x8x1xf32>
    %166 = arith.mulf %165, %161 : vector<1x1x8x1xf32>
    %167 = vector.shape_cast %36 : vector<1x8x1xf32> to vector<1x1x8x1xf32>
    %168 = arith.subf %167, %166 : vector<1x1x8x1xf32>
    %cst_66 = arith.constant 0.00999999977 : f32
    %169 = vector.broadcast %cst_66 : f32 to vector<1x1x8x1xf32>
    %170 = arith.mulf %169, %168 : vector<1x1x8x1xf32>
    %171 = arith.negf %170 : vector<1x1x8x1xf32>
    %172 = math.exp %171 : vector<1x1x8x1xf32>
    %cst_67 = arith.constant 1.000000e+00 : f32
    %173 = vector.broadcast %cst_67 : f32 to vector<1x1x8x1xf32>
    %174 = arith.addf %173, %172 : vector<1x1x8x1xf32>
    %175 = arith.divf %173, %174 : vector<1x1x8x1xf32>
    %cst_68 = arith.constant 7.35151767 : f32
    %176 = vector.broadcast %cst_68 : f32 to vector<1x1x8x1xf32>
    %177 = arith.addf %150, %176 : vector<1x1x8x1xf32>
    %178 = math.log %175 : vector<1x1x8x1xf32>
    %cst_69 = arith.constant 5.000000e-01 : f32
    %179 = vector.broadcast %cst_69 : f32 to vector<1x1x8x1xf32>
    %180 = arith.mulf %179, %177 : vector<1x1x8x1xf32>
    %181 = arith.subf %178, %180 : vector<1x1x8x1xf32>
    %182 = vector.broadcast %181 : vector<1x1x8x1xf32> to vector<1x4x8x256xf32>
    %183 = arith.subf %182, %159 : vector<1x4x8x256xf32>
    %184 = math.exp %183 : vector<1x4x8x256xf32>
    %cst_70 = arith.constant dense<0.000000e+00> : vector<1x4x256xf32>
    %185 = vector.multi_reduction <add>, %184, %cst_70 [2] : vector<1x4x8x256xf32> to vector<1x4x256xf32>
    %186 = vector.shape_cast %185 : vector<1x4x256xf32> to vector<1x4x1x256xf32>
    %187 = tpu.reciprocal %186 {approx = true} : vector<1x4x1x256xf32> -> vector<1x4x1x256xf32>
    %188 = vector.broadcast %187 : vector<1x4x1x256xf32> to vector<1x4x8x256xf32>
    %189 = arith.mulf %184, %188 : vector<1x4x8x256xf32>
    %190 = arith.mulf %189, %38 : vector<1x4x8x256xf32>
    %cst_71 = arith.constant dense<0.000000e+00> : vector<1x4x8xf32>
    %191 = vector.multi_reduction <add>, %190, %cst_71 [3] : vector<1x4x8x256xf32> to vector<1x4x8xf32>
    %192 = vector.shape_cast %191 : vector<1x4x8xf32> to vector<1x4x8x1xf32>
    %cst_72 = arith.constant dense<0.000000e+00> : vector<1x8x1xf32>
    %193 = vector.multi_reduction <add>, %192, %cst_72 [1] : vector<1x4x8x1xf32> to vector<1x8x1xf32>
    %194 = vector.shape_cast %193 : vector<1x8x1xf32> to vector<1x1x8x1xf32>
    %cst_73 = arith.constant 9.99999997E-7 : f32
    %195 = vector.broadcast %cst_73 : f32 to vector<1x1x8x1xf32>
    %196 = arith.addf %194, %195 : vector<1x1x8x1xf32>
    %197 = tpu.reciprocal %196 : vector<1x1x8x1xf32> -> vector<1x1x8x1xf32>
    %cst_74 = arith.constant 0.000000e+00 : f32
    %198 = vector.broadcast %cst_74 : f32 to vector<1x1x8x1xf32>
    %c0_75 = arith.constant 0 : index
    %c0_76 = arith.constant 0 : index
    %c0_77 = arith.constant 0 : index
    %c0_78 = arith.constant 0 : index
    %199 = vector.load %arg8[%c0_75, %c0_76, %c0_77, %c0_78] : memref<1x4x32x256xf32, #tpu.memory_space<vmem>>, vector<1x4x8x256xf32>
    %200 = arith.mulf %190, %199 : vector<1x4x8x256xf32>
    %cst_79 = arith.constant dense<0.000000e+00> : vector<1x4x8xf32>
    %201 = vector.multi_reduction <add>, %200, %cst_79 [3] : vector<1x4x8x256xf32> to vector<1x4x8xf32>
    %202 = vector.shape_cast %201 : vector<1x4x8xf32> to vector<1x4x8x1xf32>
    %cst_80 = arith.constant dense<0.000000e+00> : vector<1x8x1xf32>
    %203 = vector.multi_reduction <add>, %202, %cst_80 [1] : vector<1x4x8x1xf32> to vector<1x8x1xf32>
    %204 = vector.shape_cast %203 : vector<1x8x1xf32> to vector<1x1x8x1xf32>
    %205 = arith.mulf %204, %197 : vector<1x1x8x1xf32>
    %206 = arith.mulf %200, %199 : vector<1x4x8x256xf32>
    %cst_81 = arith.constant dense<0.000000e+00> : vector<1x4x8xf32>
    %207 = vector.multi_reduction <add>, %206, %cst_81 [3] : vector<1x4x8x256xf32> to vector<1x4x8xf32>
    %208 = vector.shape_cast %207 : vector<1x4x8xf32> to vector<1x4x8x1xf32>
    %cst_82 = arith.constant dense<0.000000e+00> : vector<1x8x1xf32>
    %209 = vector.multi_reduction <add>, %208, %cst_82 [1] : vector<1x4x8x1xf32> to vector<1x8x1xf32>
    %210 = vector.shape_cast %209 : vector<1x8x1xf32> to vector<1x1x8x1xf32>
    %211 = arith.mulf %210, %197 : vector<1x1x8x1xf32>
    %212 = arith.mulf %205, %205 : vector<1x1x8x1xf32>
    %213 = arith.subf %211, %212 : vector<1x1x8x1xf32>
    %cst_83 = arith.constant 9.99999997E-7 : f32
    %214 = vector.broadcast %cst_83 : f32 to vector<1x1x8x1xf32>
    %215 = arith.addf %213, %214 : vector<1x1x8x1xf32>
    %216 = math.log %215 : vector<1x1x8x1xf32>
    %217 = arith.addf %198, %216 : vector<1x1x8x1xf32>
    %c0_84 = arith.constant 0 : index
    %c0_85 = arith.constant 0 : index
    %c8_86 = arith.constant 8 : index
    %c0_87 = arith.constant 0 : index
    %218 = vector.load %arg8[%c0_84, %c0_85, %c8_86, %c0_87] : memref<1x4x32x256xf32, #tpu.memory_space<vmem>>, vector<1x4x8x256xf32>
    %219 = arith.mulf %190, %218 : vector<1x4x8x256xf32>
    %cst_88 = arith.constant dense<0.000000e+00> : vector<1x4x8xf32>
    %220 = vector.multi_reduction <add>, %219, %cst_88 [3] : vector<1x4x8x256xf32> to vector<1x4x8xf32>
    %221 = vector.shape_cast %220 : vector<1x4x8xf32> to vector<1x4x8x1xf32>
    %cst_89 = arith.constant dense<0.000000e+00> : vector<1x8x1xf32>
    %222 = vector.multi_reduction <add>, %221, %cst_89 [1] : vector<1x4x8x1xf32> to vector<1x8x1xf32>
    %223 = vector.shape_cast %222 : vector<1x8x1xf32> to vector<1x1x8x1xf32>
    %224 = arith.mulf %223, %197 : vector<1x1x8x1xf32>
    %225 = arith.mulf %219, %218 : vector<1x4x8x256xf32>
    %cst_90 = arith.constant dense<0.000000e+00> : vector<1x4x8xf32>
    %226 = vector.multi_reduction <add>, %225, %cst_90 [3] : vector<1x4x8x256xf32> to vector<1x4x8xf32>
    %227 = vector.shape_cast %226 : vector<1x4x8xf32> to vector<1x4x8x1xf32>
    %cst_91 = arith.constant dense<0.000000e+00> : vector<1x8x1xf32>
    %228 = vector.multi_reduction <add>, %227, %cst_91 [1] : vector<1x4x8x1xf32> to vector<1x8x1xf32>
    %229 = vector.shape_cast %228 : vector<1x8x1xf32> to vector<1x1x8x1xf32>
    %230 = arith.mulf %229, %197 : vector<1x1x8x1xf32>
    %231 = arith.mulf %224, %224 : vector<1x1x8x1xf32>
    %232 = arith.subf %230, %231 : vector<1x1x8x1xf32>
    %cst_92 = arith.constant 9.99999997E-7 : f32
    %233 = vector.broadcast %cst_92 : f32 to vector<1x1x8x1xf32>
    %234 = arith.addf %232, %233 : vector<1x1x8x1xf32>
    %235 = math.log %234 : vector<1x1x8x1xf32>
    %236 = arith.addf %217, %235 : vector<1x1x8x1xf32>
    %c0_93 = arith.constant 0 : index
    %c0_94 = arith.constant 0 : index
    %c16_95 = arith.constant 16 : index
    %c0_96 = arith.constant 0 : index
    %237 = vector.load %arg8[%c0_93, %c0_94, %c16_95, %c0_96] : memref<1x4x32x256xf32, #tpu.memory_space<vmem>>, vector<1x4x8x256xf32>
    %238 = arith.mulf %190, %237 : vector<1x4x8x256xf32>
    %cst_97 = arith.constant dense<0.000000e+00> : vector<1x4x8xf32>
    %239 = vector.multi_reduction <add>, %238, %cst_97 [3] : vector<1x4x8x256xf32> to vector<1x4x8xf32>
    %240 = vector.shape_cast %239 : vector<1x4x8xf32> to vector<1x4x8x1xf32>
    %cst_98 = arith.constant dense<0.000000e+00> : vector<1x8x1xf32>
    %241 = vector.multi_reduction <add>, %240, %cst_98 [1] : vector<1x4x8x1xf32> to vector<1x8x1xf32>
    %242 = vector.shape_cast %241 : vector<1x8x1xf32> to vector<1x1x8x1xf32>
    %243 = arith.mulf %242, %197 : vector<1x1x8x1xf32>
    %244 = arith.mulf %238, %237 : vector<1x4x8x256xf32>
    %cst_99 = arith.constant dense<0.000000e+00> : vector<1x4x8xf32>
    %245 = vector.multi_reduction <add>, %244, %cst_99 [3] : vector<1x4x8x256xf32> to vector<1x4x8xf32>
    %246 = vector.shape_cast %245 : vector<1x4x8xf32> to vector<1x4x8x1xf32>
    %cst_100 = arith.constant dense<0.000000e+00> : vector<1x8x1xf32>
    %247 = vector.multi_reduction <add>, %246, %cst_100 [1] : vector<1x4x8x1xf32> to vector<1x8x1xf32>
    %248 = vector.shape_cast %247 : vector<1x8x1xf32> to vector<1x1x8x1xf32>
    %249 = arith.mulf %248, %197 : vector<1x1x8x1xf32>
    %250 = arith.mulf %243, %243 : vector<1x1x8x1xf32>
    %251 = arith.subf %249, %250 : vector<1x1x8x1xf32>
    %cst_101 = arith.constant 9.99999997E-7 : f32
    %252 = vector.broadcast %cst_101 : f32 to vector<1x1x8x1xf32>
    %253 = arith.addf %251, %252 : vector<1x1x8x1xf32>
    %254 = math.log %253 : vector<1x1x8x1xf32>
    %255 = arith.addf %236, %254 : vector<1x1x8x1xf32>
    %c0_102 = arith.constant 0 : index
    %c0_103 = arith.constant 0 : index
    %c24_104 = arith.constant 24 : index
    %c0_105 = arith.constant 0 : index
    %256 = vector.load %arg8[%c0_102, %c0_103, %c24_104, %c0_105] : memref<1x4x32x256xf32, #tpu.memory_space<vmem>>, vector<1x4x8x256xf32>
    %257 = arith.mulf %190, %256 : vector<1x4x8x256xf32>
    %cst_106 = arith.constant dense<0.000000e+00> : vector<1x4x8xf32>
    %258 = vector.multi_reduction <add>, %257, %cst_106 [3] : vector<1x4x8x256xf32> to vector<1x4x8xf32>
    %259 = vector.shape_cast %258 : vector<1x4x8xf32> to vector<1x4x8x1xf32>
    %cst_107 = arith.constant dense<0.000000e+00> : vector<1x8x1xf32>
    %260 = vector.multi_reduction <add>, %259, %cst_107 [1] : vector<1x4x8x1xf32> to vector<1x8x1xf32>
    %261 = vector.shape_cast %260 : vector<1x8x1xf32> to vector<1x1x8x1xf32>
    %262 = arith.mulf %261, %197 : vector<1x1x8x1xf32>
    %263 = arith.mulf %257, %256 : vector<1x4x8x256xf32>
    %cst_108 = arith.constant dense<0.000000e+00> : vector<1x4x8xf32>
    %264 = vector.multi_reduction <add>, %263, %cst_108 [3] : vector<1x4x8x256xf32> to vector<1x4x8xf32>
    %265 = vector.shape_cast %264 : vector<1x4x8xf32> to vector<1x4x8x1xf32>
    %cst_109 = arith.constant dense<0.000000e+00> : vector<1x8x1xf32>
    %266 = vector.multi_reduction <add>, %265, %cst_109 [1] : vector<1x4x8x1xf32> to vector<1x8x1xf32>
    %267 = vector.shape_cast %266 : vector<1x8x1xf32> to vector<1x1x8x1xf32>
    %268 = arith.mulf %267, %197 : vector<1x1x8x1xf32>
    %269 = arith.mulf %262, %262 : vector<1x1x8x1xf32>
    %270 = arith.subf %268, %269 : vector<1x1x8x1xf32>
    %cst_110 = arith.constant 9.99999997E-7 : f32
    %271 = vector.broadcast %cst_110 : f32 to vector<1x1x8x1xf32>
    %272 = arith.addf %270, %271 : vector<1x1x8x1xf32>
    %273 = math.log %272 : vector<1x1x8x1xf32>
    %274 = arith.addf %255, %273 : vector<1x1x8x1xf32>
    %cst_111 = arith.constant 4.000000e+00 : f32
    %275 = vector.broadcast %cst_111 : f32 to vector<1x8x1xf32>
    %276 = arith.mulf %275, %35 : vector<1x8x1xf32>
    %277 = vector.shape_cast %276 : vector<1x8x1xf32> to vector<1x1x8x1xf32>
    %278 = arith.addf %274, %277 : vector<1x1x8x1xf32>
    %279 = arith.mulf %278, %196 : vector<1x1x8x1xf32>
    %280 = vector.shape_cast %36 : vector<1x8x1xf32> to vector<1x1x8x1xf32>
    %281 = arith.subf %280, %279 : vector<1x1x8x1xf32>
    %cst_112 = arith.constant 0.00999999977 : f32
    %282 = vector.broadcast %cst_112 : f32 to vector<1x1x8x1xf32>
    %283 = arith.mulf %282, %281 : vector<1x1x8x1xf32>
    %284 = arith.negf %283 : vector<1x1x8x1xf32>
    %285 = math.exp %284 : vector<1x1x8x1xf32>
    %cst_113 = arith.constant 1.000000e+00 : f32
    %286 = vector.broadcast %cst_113 : f32 to vector<1x1x8x1xf32>
    %287 = arith.addf %286, %285 : vector<1x1x8x1xf32>
    %288 = arith.divf %286, %287 : vector<1x1x8x1xf32>
    %c0_114 = arith.constant 0 : index
    %c0_115 = arith.constant 0 : index
    %c0_116 = arith.constant 0 : index
    %c0_117 = arith.constant 0 : index
    %289 = vector.load %arg7[%c0_114, %c0_115, %c0_116, %c0_117] : memref<1x1x8x1xf32, #tpu.memory_space<vmem>>, vector<1x1x8x1xf32>
    tpu.vector_store %arg7[%c0_114, %c0_115, %c0_116, %c0_117], %288 {strides = array<i32>} : memref<1x1x8x1xf32, #tpu.memory_space<vmem>>, vector<1x1x8x1xf32>,
    return
  }
  func.func @transform_0(%arg0: i32) -> (i32, i32, i32) {
    %c0_i32 = arith.constant 0 : i32
    %c0_i32_0 = arith.constant 0 : i32
    %c0_i32_1 = arith.constant 0 : i32
    %c0_i32_2 = arith.constant 0 : i32
    return %c0_i32, %c0_i32_0, %c0_i32_1 : i32, i32, i32
  }
  func.func @transform_1(%arg0: i32) -> (i32, i32, i32) {
    %c0_i32 = arith.constant 0 : i32
    %c0_i32_0 = arith.constant 0 : i32
    %c0_i32_1 = arith.constant 0 : i32
    %c0_i32_2 = arith.constant 0 : i32
    return %c0_i32, %c0_i32_0, %c0_i32_1 : i32, i32, i32
  }
  func.func @transform_2(%arg0: i32) -> (i32, i32, i32, i32) {
    %c0_i32 = arith.constant 0 : i32
    %c0_i32_0 = arith.constant 0 : i32
    %c0_i32_1 = arith.constant 0 : i32
    %c0_i32_2 = arith.constant 0 : i32
    return %arg0, %c0_i32, %c0_i32_0, %c0_i32_1 : i32, i32, i32, i32
  }
  func.func @transform_3(%arg0: i32) -> (i32, i32, i32, i32) {
    %c0_i32 = arith.constant 0 : i32
    %c0_i32_0 = arith.constant 0 : i32
    %c0_i32_1 = arith.constant 0 : i32
    %c0_i32_2 = arith.constant 0 : i32
    return %arg0, %c0_i32, %c0_i32_0, %c0_i32_1 : i32, i32, i32, i32
  }
  func.func @transform_4(%arg0: i32) -> (i32, i32, i32) {
    %c0_i32 = arith.constant 0 : i32
    %c0_i32_0 = arith.constant 0 : i32
    %c0_i32_1 = arith.constant 0 : i32
    %c0_i32_2 = arith.constant 0 : i32
    return %c0_i32, %c0_i32_0, %c0_i32_1 : i32, i32, i32
  }
  func.func @transform_5(%arg0: i32) -> (i32, i32, i32) {
    %c0_i32 = arith.constant 0 : i32
    %c0_i32_0 = arith.constant 0 : i32
    %c0_i32_1 = arith.constant 0 : i32
    %c0_i32_2 = arith.constant 0 : i32
    return %c0_i32, %c0_i32_0, %c0_i32_1 : i32, i32, i32
  }
  func.func @transform_6(%arg0: i32) -> (i32, i32, i32, i32) {
    %c0_i32 = arith.constant 0 : i32
    %c0_i32_0 = arith.constant 0 : i32
    %c0_i32_1 = arith.constant 0 : i32
    %c0_i32_2 = arith.constant 0 : i32
    return %arg0, %c0_i32, %c0_i32_0, %c0_i32_1 : i32, i32, i32, i32
  }
}

</mosaic_0001>

<bundles_post_ra>
// kernel: tpu_custom_call.1
= control target key start
LH: loop header
LB: loop body
LE: loop exit
PB: predicated region body
PF: predicated region fallthrough
CT: control target
= control target key end

     0   :  { %s2281_s21 = smov 0   ;;  %s3647_s0 = inlined_call_operand.vmem [shape: f32[1,8,1], index: 0, kind: input, shape index: {}]   ;;  %s3648_s1 = inlined_call_operand.vmem [shape: f32[1,8,1], index: 1, kind: input, shape index: {}]   ;;  %s3649_s2 = inlined_call_operand.vmem [shape: f32[2,4,1,256], index: 2, kind: input, shape index: {}]   ;;  %s3650_s3 = inlined_call_operand.vmem [shape: f32[2,4,4,256], index: 3, kind: input, shape index: {}]   ;;  %s3651_s4 = inlined_call_operand.vmem [shape: f32[4,32,4], index: 4, kind: input, shape index: {}]   ;;  %s3652_s5 = inlined_call_operand.vmem [shape: f32[4,32,1], index: 5, kind: input, shape index: {}]   ;;  %s3653_s6 = inlined_call_operand.vmem [shape: f32[2,1,8,1], index: 6, kind: output, shape index: {}]  }
   0x1 LB: > { %s2114_s22 = sadd.s32 4294967295, %s2240_s21   ;;  %p2118_p0 = scmp.ge.s32.totalorder %s2240_s21, 1  ;;  %s2240_s21 = sphi %s2281_s21, %s16_s21  }
   0x2   : > { %p221_p1 = scmp.lt.s32.totalorder %s2240_s21, 3 }
   0x4   : > { %p222_p2 = pnand %p2118_p0, %p221_p1 }
   0x6   : > { %225 = sbr.rel (%p222_p2) target bundleno = 1078 (0x436), region = 44 }
   0xb   : > { %v2292_v0 = vld [vmem:[%s3651_s4 + $0x20] sm:$0xff]  ;;  %v2297_v1 = vld [vmem:[%s3651_s4 + $0x8] sm:$0xff]  ;;  %v375_v2 = vlaneseq  ;;  %v3655_v3 = vmov 2   ;;  %v3656_v4 = vmov 0   ;;  %p254_p3 = scmp.lt.s32.totalorder %s2114_s22, 1  ;;  %v2313_v7 = vld [vmem:[%s3651_s4 + $0x10] sm:$0xff] }
   0xc   : > { %2145 = vset.pattern.permute.xlu0 %v3655_v3  ;;  %2140 = vset.pattern.permute.xlu1 %v3656_v4  ;;  %v2308_v6 = vld [vmem:[%s3651_s4 + $0x28] sm:$0xff]  ;;  %v2244_v12 = vmov 1   ;;  %v2344_v14 = vld [vmem:[%s3651_s4 + $0x50] sm:$0xff]  ;;  %v2356_v17 = vld [vmem:[%s3651_s4] sm:$0xff]  ;;  %v3654_v30 = vmov 3   ;;  %vm2047_vm0 = vcmask 7168  }
   0xd   : > { %313 = vperm.xlu1 %2140, %v2292_v0   ;;  %684 = vperm.xlu0 %2145, %v2297_v1   ;;  %v2303_v5 = vshrl.u32 %v375_v2, 7  ;;  %s3898_s22 = smov (!%p254_p3, %s2114_s22), 1  ;;  %v284_v9 = vld [vmem:[%s3651_s4 + $0x48] sm:$0xff]  ;;  %v2367_v19 = vld [vmem:[%s3651_s4 + $0x40] sm:$0xff]  ;;  %v2377_v21 = vld [vmem:[%s3651_s4 + $0x30] sm:$0xff] }
   0xe   : > { %s2127_s7 = sshll.u32 %s3898_s22, 5  ;;  %v2383_v22 = vld [vmem:[%s3651_s4 + $0x18] sm:$0xff]  ;;  %v2393_v24 = vld [vmem:[%s3651_s4 + $0x60] sm:$0xff]  ;;  %v2402_v26 = vld [vmem:[%s3651_s4 + $0x70] sm:$0xff]  ;;  %s2119_s28 = sshll.u32 %s3898_s22, 3 }
   0xf   : > { %v2318_v8 = vsub.s32 4, %v2303_v5  ;;  %s2326_s10 = scalar_lea.vmem %s3650_s3, %s2127_s7  ;;  %v2338_v13 = vsub.s32 5, %v2303_v5  ;;  %v2410_v27 = vld [vmem:[%s3651_s4 + $0x78] sm:$0xff]  ;;  %v2416_v28 = vsub.s32 3, %v2303_v5  ;;  %v2419_v29 = vsub.s32 7, %v2303_v5  ;;  %v2447_v37 = vld [vmem:[%s3651_s4 + $0x68] sm:$0xff]  ;;  %s2577_s7 = scalar_lea.vmem %s3649_s2, %s2119_s28 }
  0x10   : > { %v2332_v10 = vld [vmem:[%s2326_s10 + $0x8] sm:$0xff]  ;;  %v2349_v16 = vld [vmem:[%s2326_s10 + $0x10] sm:$0xff]  ;;  %v2388_v23 = vld [vmem:[%s2326_s10 + $0x18] sm:$0xff]  ;;  %v2535_v57 = vsub.s32 0, %v2303_v5  ;;  %v2540_v59 = vsub.s32 1, %v2303_v5  ;;  %s266_s13 = scalar_lea.vmem %s3653_s6, %s2119_s28 }
  0x11   : > { %318 = vperm.xlu1 %2140, %v2308_v6   ;;  %688 = vperm.xlu0 %2145, %v2313_v7   ;;  %v390_v11 = vrot.slane %v2332_v10, %v2318_v8  ;;  %v558_v15 = vrot.slane %v2332_v10, %v2338_v13  ;;  %v398_v18 = vrot.slane %v2349_v16, %v2318_v8  ;;  %v2426_v31 = vld [vmem:[%s3651_s4 + $0x38] sm:$0xff]  ;;  %v1079_v47 = vld [vmem:[%s3652_s5] sm:$0xff]  ;;  %v1084_v48 = vld [vmem:[%s3652_s5 + $0x28] sm:$0xff] }
  0x12   : > { %v566_v20 = vrot.slane %v2349_v16, %v2338_v13  ;;  %v962_v32 = vrot.slane %v2349_v16, %v2416_v28  ;;  %v966_v33 = vrot.slane %v2349_v16, %v2419_v29  ;;  %v970_v38 = vrot.slane %v2388_v23, %v2416_v28  ;;  %v2467_v42 = vld [vmem:[%s3651_s4 + $0x58] sm:$0xff]  ;;  %v1085_v49 = vld [vmem:[%s3652_s5 + $0x30] sm:$0xff] }
  0x13   : > { %v974_v39 = vrot.slane %v2388_v23, %v2419_v29  ;;  %v954_v43 = vrot.slane %v2332_v10, %v2416_v28  ;;  %v958_v44 = vrot.slane %v2332_v10, %v2419_v29  ;;  %v1089_v50 = vld [vmem:[%s3652_s5 + $0x50] sm:$0xff]  ;;  %v1090_v51 = vld [vmem:[%s3652_s5 + $0x58] sm:$0xff]  ;;  %v2549_v61 = vrot.slane %v390_v11, %v2535_v57 }
  0x14   : > { %v2434_v34 = vrot.slane %v962_v32, %v2416_v28  ;;  %v2437_v35 = vrot.slane %v966_v33, %v2416_v28  ;;  %v2459_v40 = vrot.slane %v970_v38, %v2416_v28  ;;  %v1094_v52 = vld [vmem:[%s3652_s5 + $0x78] sm:$0xff]  ;;  %v2555_v62 = vrot.slane %v558_v15, %v2540_v59 }
  0x15   : > { %2141 = vset.pattern.permute.xlu1 %v2244_v12  ;;  %716 = vperm.xlu0 %2145, %v284_v9   ;;  %v2462_v41 = vrot.slane %v974_v39, %v2416_v28  ;;  %v2484_v45 = vrot.slane %v954_v43, %v2416_v28  ;;  %v2487_v46 = vrot.slane %v958_v44, %v2416_v28  ;;  %v2584_v11 = vsub.s32 6, %v2303_v5  ;;  %v269_v39 = vld [vmem:[%s2577_s7 + $0x4] sm:$0x3] }
  0x16   : > { %484 = vperm.xlu1 %2141, %v2297_v1   ;;  %3744 = vst [vmem:[#allocation3_spill] sm:$0xff] %v2434_v34  ;;  %3745 = vst [vmem:[#allocation4_spill] sm:$0xff] %v2437_v35  ;;  %v2605_v33 = vsub.s32 2, %v2303_v5 }
  0x17   : > { %3746 = vst [vmem:[#allocation5_spill] sm:$0xff] %v2459_v40  ;;  %3747 = vst [vmem:[#allocation6_spill] sm:$0xff] %v2462_v41 }
  0x18   : > { %3748 = vst [vmem:[#allocation7_spill] sm:$0xff] %v2484_v45  ;;  %3749 = vst [vmem:[#allocation8_spill] sm:$0xff] %v2487_v46 }
  0x19   : > { %720 = vperm.xlu0 %2145, %v2344_v14   ;;  %3751 = vst [vmem:[#allocation10_spill] sm:$0xff] %v2584_v11 }
  0x1a   : > { %496 = vperm.xlu1 %2141, %v2292_v0  }
  0x1d   : > { %2153 = vset.pattern.permute.xlu0 %v2244_v12 }
  0x1e   : > { %2142 = vset.pattern.permute.xlu1 %v3656_v4  ;;  %480 = vperm.xlu0 %2153, %v2356_v17  }
  0x1f   : > { %303 = vperm.xlu1 %2142, %v2313_v7  }
  0x22   : > { %500 = vperm.xlu0 %2153, %v2308_v6  }
  0x23   : > { %333 = vperm.xlu1 %2142, %v2367_v19  }
  0x26   : > { %488 = vperm.xlu0 %2153, %v2313_v7  }
  0x27   : > { %338 = vperm.xlu1 %2142, %v284_v9  }
  0x2a   : > { %516 = vperm.xlu0 %2153, %v284_v9  }
  0x2b   : > { %2143 = vset.pattern.permute.xlu1 %v2244_v12 }
  0x2c   : > { %504 = vperm.xlu1 %2143, %v2377_v21  }
  0x2e   : > { %492 = vperm.xlu0 %2153, %v2383_v22  }
  0x30   : > { %512 = vperm.xlu1 %2143, %v2367_v19  }
  0x32   : > { %528 = vperm.xlu0 %2153, %v2393_v24  }
  0x34   : > { %2144 = vset.pattern.permute.xlu1 %v3655_v3 }
  0x35   : > { %680 = vperm.xlu1 %2144, %v2356_v17  }
  0x36   : > { %536 = vperm.xlu0 %2153, %v2402_v26  }
  0x39   : > { %696 = vperm.xlu1 %2144, %v2292_v0  }
  0x3a   : > { %540 = vperm.xlu0 %2153, %v2410_v27  }
  0x3d   : > { %700 = vperm.xlu1 %2144, %v2308_v6  }
  0x3e   : > { %2156 = vset.pattern.permute.xlu0 %v3654_v30 }
  0x3f   : > { %884 = vperm.xlu0 %2156, %v2297_v1  }
  0x41   : > { %2146 = vset.pattern.permute.xlu1 %v3656_v4 }
  0x42   : > { %328 = vperm.xlu1 %2146, %v2426_v31  }
  0x43   : > { %888 = vperm.xlu0 %2156, %v2313_v7  }
  0x46   : > { %343 = vperm.xlu1 %2146, %v2344_v14  }
  0x47   : > { %916 = vperm.xlu0 %2156, %v284_v9  }
  0x4a   : > { %358 = vperm.xlu1 %2146, %v2447_v37  }
  0x4b   : > { %892 = vperm.xlu0 %2156, %v2383_v22  }
  0x4e   : > { %2147 = vset.pattern.permute.xlu1 %v2244_v12 }
  0x4f   : > { %928 = vperm.xlu0 %2156, %v2393_v24   ;;  %508 = vperm.xlu1 %2147, %v2426_v31  }
  0x53   : > { %924 = vperm.xlu0 %2156, %v2467_v42   ;;  %520 = vperm.xlu1 %2147, %v2344_v14  }
  0x57   : > { %940 = vperm.xlu0 %2156, %v2410_v27   ;;  %532 = vperm.xlu1 %2147, %v2447_v37  }
  0x5b   : > { %2163 = vset.pattern.permute.xlu0 %v3656_v4  ;;  %2148 = vset.pattern.permute.xlu1 %v3655_v3 }
  0x5c   : > { %293 = vperm.xlu0 %2163, %v2356_v17   ;;  %704 = vperm.xlu1 %2148, %v2377_v21  }
  0x60   : > { %298 = vperm.xlu0 %2163, %v2297_v1   ;;  %712 = vperm.xlu1 %2148, %v2367_v19  }
  0x64   : > { %323 = vperm.xlu0 %2163, %v2377_v21   ;;  %2149 = vset.pattern.permute.xlu1 %v3654_v30 }
  0x65   : > { %880 = vperm.xlu1 %2149, %v2356_v17  }
  0x68   : > { %308 = vperm.xlu0 %2163, %v2383_v22  }
  0x69   : > { %896 = vperm.xlu1 %2149, %v2292_v0  }
  0x6c   : > { %353 = vperm.xlu0 %2163, %v2393_v24  }
  0x6d   : > { %900 = vperm.xlu1 %2149, %v2308_v6  }
  0x70   : > { %348 = vperm.xlu0 %2163, %v2467_v42  }
  0x71   : > { %2150 = vset.pattern.permute.xlu1 %v3656_v4 }
  0x72   : > { %363 = vperm.xlu1 %2150, %v2402_v26  }
  0x74   : > { %1097 = vperm.xlu0 %2163, %v1079_v47   ;;  %v2619_v47 = vrot.slane %v566_v20, %v2540_v59 }
  0x76   : > { %2151 = vset.pattern.permute.xlu1 %v2244_v12  ;;  %v268_v12 = vld [vmem:[%s2577_s7 + $0x2] sm:$0x3] }
  0x77   : > { %524 = vperm.xlu1 %2151, %v2467_v42   ;;  %v2602_v32 = vrot.slane %v268_v12, %v2540_v59 }
  0x78   : > { %1122 = vperm.xlu0 %2163, %v1084_v48   ;;  %v2625_v48 = vrot.slane %v269_v39, %v2535_v57 }
  0x79   : > { %3754 = vst [vmem:[#allocation13_spill] sm:$0xff] %v2602_v32 }
  0x7a   : > { %3756 = vst [vmem:[#allocation15_spill] sm:$0xff] %v2625_v48 }
  0x7b   : > { %2152 = vset.pattern.permute.xlu1 %v3655_v3 }
  0x7c   : > { %692 = vperm.xlu1 %2152, %v2383_v22   ;;  %1127 = vperm.xlu0 %2163, %v1085_v49   ;;  %v2628_v49 = vrot.slane %v269_v39, %v2540_v59 }
  0x7e   : > { %3757 = vst [vmem:[#allocation16_spill] sm:$0xff] %v2628_v49 }
  0x80   : > { %708 = vperm.xlu1 %2152, %v2426_v31   ;;  %1147 = vperm.xlu0 %2163, %v1089_v50   ;;  %v2634_v50 = vrot.slane %v398_v18, %v2535_v57  ;;  %v1291_v18 = vadd.f32 %v2628_v49, %v2625_v48  ;;  %v562_v49 = vrot.slane %v2349_v16, %v2540_v59 }
  0x81   : > { %v762_v48 = vrot.slane %v2349_v16, %v2605_v33 }
  0x83   : > { %v2733_v46 = vrot.slane %v762_v48, %v2605_v33 }
  0x84   : > { %728 = vperm.xlu1 %2152, %v2393_v24   ;;  %1152 = vperm.xlu0 %2163, %v1090_v51   ;;  %v2599_v24 = vrot.slane %v268_v12, %v2535_v57 }
  0x85   : > { %3764 = vst [vmem:[#allocation23_spill] sm:$0xff] %v2733_v46 }
  0x86   : > { %3753 = vst [vmem:[#allocation12_spill] sm:$0xff] %v2599_v24  ;;  %v1288_v5 = vadd.f32 %v2602_v32, %v2599_v24 }
  0x88   : > { %v2523_v53 = vpop.permute.xlu1 %313  ;;  %732 = vperm.xlu1 %2152, %v2447_v37   ;;  %v2526_v54 = vpop.permute.xlu0 %684  ;;  %1172 = vperm.xlu0 %2163, %v1094_v52  }
  0x89   : > { %v456_v1 = vmul.f32 %v2549_v61, %v2523_v53 }
  0x8c   : > { %v2528_v55 = vpop.permute.xlu1 %318  ;;  %2154 = vset.pattern.permute.xlu1 %v3654_v30  ;;  %v2531_v56 = vpop.permute.xlu0 %688 }
  0x8d   : > { %904 = vperm.xlu1 %2154, %v2377_v21   ;;  %v458_v17 = vmul.f32 %v2549_v61, %v2528_v55 }
  0x90   : > { %v2537_v58 = vpop.permute.xlu0 %716 }
  0x91   : > { %v2542_v60 = vpop.permute.xlu1 %484  ;;  %912 = vperm.xlu1 %2154, %v2367_v19   ;;  %v766_v19 = vrot.slane %v2349_v16, %v2584_v11 }
  0x93   : > { %v2611_v43 = vrot.slane %v766_v19, %v2605_v33 }
  0x94   : > { %v2557_v63 = vpop.permute.xlu0 %720 }
  0x95   : > { %3750 = vst [vmem:[#allocation9_spill] sm:$0xff] %v2557_v63  ;;  %v2559_v0 = vpop.permute.xlu1 %496  ;;  %2155 = vset.pattern.permute.xlu1 %v3656_v4  ;;  %3755 = vst [vmem:[#allocation14_spill] sm:$0xff] %v2611_v43  ;;  %v834_v51 = vmul.f32 %v2611_v43, %v2537_v58 }
  0x96   : > { %v624_v2 = vmul.f32 %v2555_v62, %v2559_v0  ;;  %368 = vperm.xlu1 %2155, %v2410_v27  }
  0x98   : > { %v2568_v6 = vadd.f32 %v624_v2, %v456_v1 }
  0x99   : > { %v2570_v7 = vpop.permute.xlu0 %480 }
  0x9a   : > { %v2579_v9 = vpop.permute.xlu1 %303  ;;  %2157 = vset.pattern.permute.xlu1 %v3655_v3  ;;  %v1083_v3 = vld [vmem:[%s3652_s5 + $0x20] sm:$0xff] }
  0x9b   : > { %724 = vperm.xlu1 %2157, %v2467_v42  }
  0x9d   : > { %v2587_v15 = vpop.permute.xlu0 %500 }
  0x9e   : > { %v626_v21 = vmul.f32 %v2555_v62, %v2587_v15  ;;  %v2595_v22 = vpop.permute.xlu1 %333 }
  0x9f   : > { %3752 = vst [vmem:[#allocation11_spill] sm:$0xff] %v2595_v22  ;;  %736 = vperm.xlu1 %2157, %v2402_v26  }
  0xa0   : > { %v2607_v38 = vadd.f32 %v626_v21, %v458_v17  ;;  %v464_v21 = vmul.f32 %v2634_v50, %v2595_v22 }
  0xa1   : > { %v489_v42 = vpop.permute.xlu0 %488 }
  0xa2   : > { %v2613_v44 = vpop.permute.xlu1 %338 }
  0xa3   : > { %2158 = vset.pattern.permute.xlu1 %v3654_v30  ;;  %v466_v52 = vmul.f32 %v2634_v50, %v2613_v44 }
  0xa4   : > { %908 = vperm.xlu1 %2158, %v2426_v31  }
  0xa5   : > { %v2637_v20 = vpop.permute.xlu0 %516 }
  0xa6   : > { %v634_v1 = vmul.f32 %v2619_v47, %v2637_v20 }
  0xa7   : > { %v2645_v2 = vpop.permute.xlu1 %504  ;;  %1289 = vadd.xlane.f32.xlu0 %v1288_v5  ;;  %v271_v5 = vld [vmem:[%s2326_s10] sm:$0xff] }
  0xa8   : > { %v666_v12 = vadd.f32 %v634_v1, %v466_v52  ;;  %920 = vperm.xlu1 %2158, %v2344_v14   ;;  %v758_v14 = vrot.slane %v2332_v10, %v2584_v11  ;;  %v546_v1 = vrot.slane %v271_v5, %v2540_v59  ;;  %v382_v25 = vrot.slane %v271_v5, %v2318_v8 }
  0xa9   : > { %v2650_v31 = vpop.permute.xlu0 %492 }
  0xaa   : > { %v2652_v17 = vadd.f32 %v834_v51, %v666_v12  ;;  %v1080_v51 = vld [vmem:[%s3652_s5 + $0x8] sm:$0xff]  ;;  %v2704_v22 = vrot.slane %v382_v25, %v2535_v57 }
  0xab   : > { %v2654_v19 = vpop.permute.xlu1 %512  ;;  %1292 = vadd.xlane.f32.xlu0 %v1291_v18  ;;  %v378_v18 = vrot.slane %v271_v5, %v2535_v57 }
  0xac   : > { %3758 = vst [vmem:[#allocation17_spill] sm:$0xff] %v2654_v19  ;;  %v632_v39 = vmul.f32 %v2619_v47, %v2654_v19  ;;  %932 = vperm.xlu1 %2158, %v2447_v37   ;;  %v550_v37 = vrot.slane %v271_v5, %v2338_v13  ;;  %v394_v19 = vrot.slane %v2349_v16, %v2535_v57 }
  0xad   : > { %v2662_v36 = vpop.permute.xlu0 %528 }
  0xae   : > { %3759 = vst [vmem:[#allocation18_spill] sm:$0xff] %v2662_v36  ;;  %v2666_v52 = vadd.f32 %v632_v39, %v464_v21  ;;  %v2681_v21 = vrot.slane %v758_v14, %v2605_v33  ;;  %v746_v39 = vrot.slane %v271_v5, %v2605_v33  ;;  %v2696_v14 = vrot.slane %v378_v18, %v2535_v57 }
  0xaf   : > { %v2701_v24 = vrot.slane %v550_v37, %v2540_v59  ;;  %v946_v37 = vrot.slane %v271_v5, %v2416_v28  ;;  %v2723_v36 = vrot.slane %v562_v49, %v2540_v59  ;;  %v3765_v49 = vmov 2  }
  0xb0   : > { %2159 = vset.pattern.permute.xlu1 %v3656_v4  ;;  %v2674_v12 = vpop.permute.xlu1 %680  ;;  %v750_v4 = vrot.slane %v271_v5, %v2584_v11  ;;  %v2713_v18 = vrot.slane %v746_v39, %v2605_v33  ;;  %v451_v39 = vmul.f32 %v2696_v14, %v2579_v9 }
  0xb1   : > { %3760 = vst [vmem:[#allocation19_spill] sm:$0xff] %v2674_v12  ;;  %1102 = vperm.xlu1 %2159, %v1080_v51   ;;  %v2678_v30 = vpop.permute.xlu0 %536  ;;  %v2693_v51 = vrot.slane %v546_v1, %v2540_v59  ;;  %v950_v12 = vrot.slane %v271_v5, %v2419_v29  ;;  %v620_v16 = vmul.f32 %v2701_v24, %v489_v42 }
  0xb2   : > { %3761 = vst [vmem:[#allocation20_spill] sm:$0xff] %v2678_v30  ;;  %v2719_v25 = vrot.slane %v750_v4, %v2605_v33  ;;  %v452_v4 = vmul.f32 %v2704_v22, %v2579_v9  ;;  %v2738_v29 = vrot.slane %v394_v19, %v2535_v57  ;;  %v2748_v48 = vrot.slane %v946_v37, %v2416_v28 }
  0xb3   : > { %v619_v30 = vmul.f32 %v2693_v51, %v489_v42 }
  0xb4   : > { %v2698_v32 = vpop.permute.xlu1 %696  ;;  %v820_v9 = vmul.f32 %v2719_v25, %v2531_v56  ;;  %v652_v19 = vadd.f32 %v620_v16, %v452_v4 }
  0xb5   : > { %v824_v11 = vmul.f32 %v2681_v21, %v2698_v32  ;;  %1117 = vperm.xlu1 %2159, %v1083_v3   ;;  %v2710_v1 = vpop.permute.xlu0 %540 }
  0xb6   : > { %3762 = vst [vmem:[#allocation21_spill] sm:$0xff] %v2710_v1  ;;  %v852_v16 = vadd.f32 %v820_v9, %v652_v19  ;;  %v3771_v19 = vmov 0  }
  0xb7   : > { %v2726_v3 = vadd.f32 %v824_v11, %v2568_v6  ;;  %v819_v6 = vmul.f32 %v2713_v18, %v2531_v56  ;;  %v651_v11 = vadd.f32 %v619_v30, %v451_v39  ;;  %v465_v30 = vmul.f32 %v2738_v29, %v2613_v44 }
  0xb8   : > { %v2730_v1 = vpop.permute.xlu1 %700  ;;  %v3767_v39 = vmov 3  }
  0xb9   : > { %3763 = vst [vmem:[#allocation22_spill] sm:$0xff] %v2726_v3  ;;  %v826_v42 = vmul.f32 %v2681_v21, %v2730_v1  ;;  %2160 = vset.pattern.permute.xlu1 %v3765_v49  ;;  %v2751_v3 = vrot.slane %v950_v12, %v2416_v28  ;;  %v633_v49 = vmul.f32 %v2723_v36, %v2637_v20 }
  0xba   : > { %v2745_v5 = vpop.permute.xlu0 %884  ;;  %740 = vperm.xlu1 %2160, %v2410_v27   ;;  %v833_v28 = vmul.f32 %v2733_v46, %v2537_v58  ;;  %v851_v27 = vadd.f32 %v819_v6, %v651_v11  ;;  %v1081_v58 = vld [vmem:[%s3652_s5 + $0x10] sm:$0xff] }
  0xbb   : > { %v2759_v45 = vadd.f32 %v826_v42, %v2607_v38  ;;  %v665_v56 = vadd.f32 %v633_v49, %v465_v30  ;;  %v1087_v30 = vld [vmem:[%s3652_s5 + $0x40] sm:$0xff] }
  0xbd   : > { %v2763_v37 = vpop.permute.xlu1 %328  ;;  %v865_v49 = vadd.f32 %v833_v28, %v665_v56  ;;  %v1088_v28 = vld [vmem:[%s3652_s5 + $0x48] sm:$0xff] }
  0xbe   : > { %3766 = vst [vmem:[#allocation24_spill] sm:$0xff] %v2763_v37  ;;  %v889_v12 = vpop.permute.xlu0 %888  ;;  %2161 = vset.pattern.permute.xlu1 %v3767_v39 }
  0xbf   : > { %v1019_v4 = vmul.f32 %v2748_v48, %v889_v12  ;;  %v1020_v20 = vmul.f32 %v2751_v3, %v889_v12  ;;  %936 = vperm.xlu1 %2161, %v2402_v26  }
  0xc1   : > { %v2771_v38 = vadd.f32 %v1019_v4, %v851_v27  ;;  %v2773_v44 = vadd.f32 %v1020_v20, %v852_v16  ;;  %v2775_v42 = vpop.permute.xlu1 %343 }
  0xc2   : > { %3770 = vst [vmem:[#allocation27_spill] sm:$0xff] %v2775_v42  ;;  %v917_v6 = vpop.permute.xlu0 %916 }
  0xc3   : > { %3768 = vst [vmem:[#allocation25_spill] sm:$0xff] %v2771_v38  ;;  %3769 = vst [vmem:[#allocation26_spill] sm:$0xff] %v2773_v44  ;;  %v1033_v11 = vmul.f32 %v2434_v34, %v917_v6  ;;  %v1034_v9 = vmul.f32 %v2437_v35, %v917_v6  ;;  %2162 = vset.pattern.permute.xlu1 %v3771_v19  ;;  %v1082_v19 = vld [vmem:[%s3652_s5 + $0x18] sm:$0xff] }
  0xc4   : > { %1107 = vperm.xlu1 %2162, %v1081_v58   ;;  %v462_v58 = vmul.f32 %v2549_v61, %v2763_v37 }
  0xc5   : > { %v2783_v26 = vpop.permute.xlu1 %358  ;;  %v2788_v12 = vadd.f32 %v1033_v11, %v865_v49  ;;  %v2791_v27 = vadd.f32 %v1034_v9, %v2652_v17  ;;  %v3776_v49 = vrot.slane %v2388_v23, %v2338_v13 }
  0xc6   : > { %3772 = vst [vmem:[#allocation28_spill] sm:$0xff] %v2783_v26  ;;  %v893_v39 = vpop.permute.xlu0 %892 }
  0xc7   : > { %3773 = vst [vmem:[#allocation29_spill] sm:$0xff] %v2788_v12  ;;  %3774 = vst [vmem:[#allocation30_spill] sm:$0xff] %v2791_v27  ;;  %v2794_v16 = vmul.f32 %v2748_v48, %v893_v39  ;;  %v2797_v4 = vmul.f32 %v2751_v3, %v893_v39  ;;  %v3777_v39 = vrot.slane %v2388_v23, %v2318_v8  ;;  %v1086_v27 = vld [vmem:[%s3652_s5 + $0x38] sm:$0xff] }
  0xc8   : > { %1137 = vperm.xlu1 %2162, %v1087_v30   ;;  %v2823_v30 = vrot.slane %v3776_v49, %v2540_v59  ;;  %v836_v8 = vmul.f32 %v2611_v43, %v2557_v63  ;;  %v554_v49 = vrot.slane %v2332_v10, %v2540_v59  ;;  %v386_v12 = vrot.slane %v2332_v10, %v2535_v57 }
  0xc9   : > { %v2829_v44 = vrot.slane %v3777_v39, %v2535_v57 }
  0xca   : > { %v2802_v56 = vpop.permute.xlu1 %508  ;;  %v929_v20 = vpop.permute.xlu0 %928  ;;  %v2867_v37 = vrot.slane %v554_v49, %v2540_v59 }
  0xcb   : > { %3775 = vst [vmem:[#allocation31_spill] sm:$0xff] %v2802_v56  ;;  %v630_v17 = vmul.f32 %v2555_v62, %v2802_v56  ;;  %v2809_v6 = vmul.f32 %v2459_v40, %v929_v20  ;;  %v2812_v11 = vmul.f32 %v2462_v41, %v929_v20 }
  0xcc   : > { %1142 = vperm.xlu1 %2162, %v1088_v28  }
  0xcd   : > { %v2814_v9 = vadd.f32 %v630_v17, %v462_v58  ;;  %v468_v58 = vmul.f32 %v2634_v50, %v2775_v42 }
  0xce   : > { %v2831_v20 = vpop.permute.xlu1 %520  ;;  %v925_v28 = vpop.permute.xlu0 %924 }
  0xcf   : > { %3778 = vst [vmem:[#allocation32_spill] sm:$0xff] %v2831_v20  ;;  %v636_v17 = vmul.f32 %v2619_v47, %v2831_v20  ;;  %v2838_v38 = vmul.f32 %v2434_v34, %v925_v28  ;;  %v2841_v13 = vmul.f32 %v2437_v35, %v925_v28  ;;  %v474_v28 = vmul.f32 %v2829_v44, %v2783_v26  ;;  %v1091_v26 = vld [vmem:[%s3652_s5 + $0x60] sm:$0xff] }
  0xd0   : > { %1112 = vperm.xlu1 %2162, %v1082_v19   ;;  %v1017_v35 = vmul.f32 %v2748_v48, %v2745_v5 }
  0xd1   : > { %3779 = vst [vmem:[#allocation33_spill] sm:$0xff] %v2838_v38  ;;  %3780 = vst [vmem:[#allocation34_spill] sm:$0xff] %v2841_v13  ;;  %v668_v39 = vadd.f32 %v636_v17, %v468_v58  ;;  %v818_v38 = vmul.f32 %v2719_v25, %v2526_v54 }
  0xd2   : > { %v2852_v42 = vpop.permute.xlu1 %532  ;;  %v941_v20 = vpop.permute.xlu0 %940 }
  0xd3   : > { %3781 = vst [vmem:[#allocation35_spill] sm:$0xff] %v2852_v42  ;;  %v642_v19 = vmul.f32 %v2823_v30, %v2852_v42  ;;  %v2859_v63 = vmul.f32 %v2459_v40, %v941_v20  ;;  %v2862_v58 = vmul.f32 %v2462_v41, %v941_v20  ;;  %v2864_v17 = vadd.f32 %v836_v8, %v668_v39 }
  0xd4   : > { %1132 = vperm.xlu1 %2162, %v1086_v27   ;;  %v570_v42 = vrot.slane %v2388_v23, %v2540_v59  ;;  %v2879_v20 = vrot.slane %v386_v12, %v2535_v57  ;;  %v402_v27 = vrot.slane %v2388_v23, %v2535_v57  ;;  %v623_v39 = vmul.f32 %v2867_v37, %v2559_v0 }
  0xd5   : > { %3782 = vst [vmem:[#allocation36_spill] sm:$0xff] %v2859_v63  ;;  %3783 = vst [vmem:[#allocation37_spill] sm:$0xff] %v2862_v58  ;;  %v2869_v13 = vadd.f32 %v642_v19, %v474_v28  ;;  %v754_v63 = vrot.slane %v2332_v10, %v2605_v33  ;;  %v1092_v28 = vld [vmem:[%s3652_s5 + $0x68] sm:$0xff]  ;;  %v817_v58 = vmul.f32 %v2713_v18, %v2526_v54 }
  0xd6   : > { %3784 = vst [vmem:[#allocation38_spill] sm:$0xff] %v2864_v17  ;;  %v2889_v19 = vrot.slane %v570_v42, %v2540_v59  ;;  %v455_v12 = vmul.f32 %v2879_v20, %v2523_v53  ;;  %v2901_v0 = vrot.slane %v402_v27, %v2535_v57  ;;  %v618_v42 = vmul.f32 %v2701_v24, %v2542_v60 }
  0xd7   : > { %v294_v8 = vpop.permute.xlu0 %293  ;;  %v705_v49 = vpop.permute.xlu1 %704  ;;  %v2892_v10 = vrot.slane %v754_v63, %v2605_v33  ;;  %v457_v27 = vmul.f32 %v2879_v20, %v2528_v55  ;;  %v625_v54 = vmul.f32 %v2867_v37, %v2587_v15  ;;  %v627_v55 = vmul.f32 %v2867_v37, %v2645_v2 }
  0xd8   : > { %1157 = vperm.xlu1 %2162, %v1091_v26   ;;  %v617_v26 = vmul.f32 %v2693_v51, %v2542_v60  ;;  %v655_v56 = vadd.f32 %v623_v39, %v455_v12  ;;  %v1093_v60 = vld [vmem:[%s3652_s5 + $0x70] sm:$0xff]  ;;  %v628_v39 = vmul.f32 %v2555_v62, %v2645_v2  ;;  %v621_v12 = vmul.f32 %v2693_v51, %v2650_v31 }
  0xd9   : > { %v622_v15 = vmul.f32 %v2701_v24, %v2650_v31  ;;  %v827_v62 = vmul.f32 %v2892_v10, %v705_v49  ;;  %v828_v2 = vmul.f32 %v2681_v21, %v705_v49  ;;  %v447_v31 = vmul.f32 %v2696_v14, %v294_v8 }
  0xdb   : > { %v299_v41 = vpop.permute.xlu0 %298  ;;  %v2903_v40 = vpop.permute.xlu1 %712 }
  0xdc   : > { %3785 = vst [vmem:[#allocation39_spill] sm:$0xff] %v2903_v40  ;;  %v449_v63 = vmul.f32 %v2696_v14, %v299_v41  ;;  %v450_v17 = vmul.f32 %v2704_v22, %v299_v41  ;;  %v832_v53 = vmul.f32 %v2611_v43, %v2903_v40  ;;  %1162 = vperm.xlu1 %2162, %v1092_v28  }
  0xdd   : > { %v1018_v41 = vmul.f32 %v2751_v3, %v2745_v5 }
  0xde   : > { %v649_v34 = vadd.f32 %v617_v26, %v449_v63  ;;  %v650_v43 = vadd.f32 %v618_v42, %v450_v17  ;;  %v2923_v28 = vadd.f32 %v832_v53, %v2666_v52  ;;  %v823_v42 = vmul.f32 %v2892_v10, %v2698_v32 }
  0xdf   : > { %v324_v46 = vpop.permute.xlu0 %323  ;;  %v448_v32 = vmul.f32 %v2704_v22, %v294_v8  ;;  %v3788_v8 = vld [vmem:[#allocation18_spill] sm:$0xff] }
  0xe0   : > { %v849_v40 = vadd.f32 %v817_v58, %v649_v34  ;;  %v850_v5 = vadd.f32 %v818_v38, %v650_v43  ;;  %v459_v17 = vmul.f32 %v2879_v20, %v324_v46  ;;  %v460_v52 = vmul.f32 %v2549_v61, %v324_v46  ;;  %1167 = vperm.xlu1 %2162, %v1093_v60   ;;  %v881_v26 = vpop.permute.xlu1 %880 }
  0xe1   : > { %v615_v46 = vmul.f32 %v2693_v51, %v2570_v7  ;;  %v616_v61 = vmul.f32 %v2701_v24, %v2570_v7  ;;  %v825_v51 = vmul.f32 %v2892_v10, %v2730_v1  ;;  %v3787_v24 = vld [vmem:[#allocation8_spill] sm:$0xff]  ;;  %v3790_v1 = vld [vmem:[#allocation22_spill] sm:$0xff] }
  0xe2   : > { %v659_v63 = vadd.f32 %v627_v55, %v459_v17  ;;  %v660_v53 = vadd.f32 %v628_v39, %v460_v52  ;;  %v2941_v34 = vadd.f32 %v1017_v35, %v849_v40  ;;  %v2943_v43 = vadd.f32 %v1018_v41, %v850_v5  ;;  %v3786_v55 = vld [vmem:[#allocation7_spill] sm:$0xff] }
  0xe3   : > { %v309_v38 = vpop.permute.xlu0 %308  ;;  %v855_v41 = vadd.f32 %v823_v42, %v655_v56  ;;  %v657_v5 = vadd.f32 %v625_v54, %v457_v27  ;;  %v639_v17 = vmul.f32 %v2889_v19, %v3788_v8  ;;  %v648_v27 = vadd.f32 %v616_v61, %v448_v32  ;;  %v267_v61 = vld [vmem:[%s2577_s7] sm:$0x3] }
  0xe4   : > { %v453_v58 = vmul.f32 %v2696_v14, %v309_v38  ;;  %v454_v49 = vmul.f32 %v2704_v22, %v309_v38  ;;  %v897_v60 = vpop.permute.xlu1 %896  ;;  %v2953_v35 = vadd.f32 %v827_v62, %v659_v63  ;;  %v2955_v40 = vadd.f32 %v828_v2, %v660_v53  ;;  %v3789_v62 = vld [vmem:[#allocation19_spill] sm:$0xff] }
  0xe5   : > { %v1023_v7 = vmul.f32 %v3786_v55, %v897_v60  ;;  %v1024_v39 = vmul.f32 %v3787_v24, %v897_v60  ;;  %v640_v22 = vmul.f32 %v2823_v30, %v3788_v8  ;;  %v815_v2 = vmul.f32 %v2713_v18, %v3789_v62 }
  0xe6   : > { %v653_v14 = vadd.f32 %v621_v12, %v453_v58  ;;  %v654_v52 = vadd.f32 %v622_v15, %v454_v49  ;;  %v647_v53 = vadd.f32 %v615_v46, %v447_v31  ;;  %v816_v38 = vmul.f32 %v2719_v25, %v3789_v62 }
  0xe7   : > { %v354_v56 = vpop.permute.xlu0 %353  ;;  %v2967_v42 = vadd.f32 %v1023_v7, %v855_v41  ;;  %v2970_v63 = vadd.f32 %v1024_v39, %v3790_v1  ;;  %v857_v58 = vadd.f32 %v825_v51, %v657_v5  ;;  %v1015_v41 = vmul.f32 %v2748_v48, %v881_v26 }
  0xe8   : > { %v471_v54 = vmul.f32 %v2901_v0, %v354_v56  ;;  %v472_v12 = vmul.f32 %v2829_v44, %v354_v56  ;;  %v901_v15 = vpop.permute.xlu1 %900  ;;  %v1016_v7 = vmul.f32 %v2751_v3, %v881_v26  ;;  %v847_v5 = vadd.f32 %v815_v2, %v647_v53  ;;  %v3793_v26 = vld [vmem:[#allocation20_spill] sm:$0xff] }
  0xe9   : > { %v1025_v49 = vmul.f32 %v3786_v55, %v901_v15  ;;  %v1026_v60 = vmul.f32 %v3787_v24, %v901_v15  ;;  %v848_v56 = vadd.f32 %v816_v38, %v648_v27  ;;  %v2991_v48 = vrot.slane %v267_v61, %v2535_v57 }
  0xea   : > { %v671_v39 = vadd.f32 %v639_v17, %v471_v54  ;;  %v672_v46 = vadd.f32 %v640_v22, %v472_v12  ;;  %v2994_v3 = vrot.slane %v267_v61, %v2540_v59  ;;  %v644_v17 = vmul.f32 %v2823_v30, %v3793_v26 }
  0xeb   : > { %v349_v31 = vpop.permute.xlu0 %348  ;;  %v2981_v32 = vadd.f32 %v1025_v49, %v857_v58  ;;  %v2984_v8 = vadd.f32 %v1026_v60, %v2759_v45  ;;  %3791 = vst [vmem:[#allocation7_spill] sm:$0xff] %v2991_v48  ;;  %v1047_v22 = vadd.f32 %v1015_v41, %v847_v5  ;;  %v1048_v54 = vadd.f32 %v1016_v7, %v848_v56 }
  0xec   : > { %v469_v62 = vmul.f32 %v2738_v29, %v349_v31  ;;  %v470_v51 = vmul.f32 %v2634_v50, %v349_v31  ;;  %3792 = vst [vmem:[#allocation8_spill] sm:$0xff] %v2994_v3  ;;  %v770_v56 = vrot.slane %v2388_v23, %v2605_v33 }
  0xed   : > { %v2988_v1 = vpop.permute.xlu1 %363 }
  0xee   : > { %v476_v45 = vmul.f32 %v2829_v44, %v2988_v1 }
  0xef   : > { %v1098_v12 = vpop.permute.xlu0 %1097 }
  0xf0   : > { %v3000_v50 = vadd.f32 %v644_v17, %v476_v45  ;;  %v3002_v2 = vadd.f32 %v1098_v12, %v1047_v22  ;;  %v3004_v53 = vadd.f32 %v1098_v12, %v1048_v54 }
  0xf2   : > { %v525_v27 = vpop.permute.xlu1 %524  ;;  %v1310_v15 = vmul.f32 %v2991_v48, %v3002_v2  ;;  %v1311_v38 = vmul.f32 %v2994_v3, %v3004_v53 }
  0xf3   : > { %v637_v58 = vmul.f32 %v2723_v36, %v525_v27  ;;  %v638_v49 = vmul.f32 %v2619_v47, %v525_v27  ;;  %v3794_v47 = vld [vmem:[#allocation10_spill] sm:$0xff]  ;;  %v3023_v27 = vrot.slane %v770_v56, %v2605_v33 }
  0xf4   : > { %v1318_v60 = vadd.f32 %v1311_v38, %v1310_v15  ;;  %v1334_v41 = vmul.f32 %v1310_v15, %v3002_v2  ;;  %v1335_v31 = vmul.f32 %v1311_v38, %v3004_v53  ;;  %v774_v54 = vrot.slane %v2388_v23, %v3794_v47  ;;  %v3799_v47 = vld [vmem:[#allocation39_spill] sm:$0xff] }
  0xf5   : > { %v669_v7 = vadd.f32 %v637_v58, %v469_v62  ;;  %v670_v61 = vadd.f32 %v638_v49, %v470_v51 }
  0xf6   : > { %1319 = vadd.xlane.f32.xlu0 %v1318_v60  ;;  %v3016_v17 = vadd.f32 %v1335_v31, %v1334_v41  ;;  %v3027_v38 = vrot.slane %v774_v54, %v2605_v33  ;;  %v3800_v54 = vld [vmem:[#allocation23_spill] sm:$0xff] }
  0xf7   : > { %v693_v5 = vpop.permute.xlu1 %692 }
  0xf8   : > { %v821_v45 = vmul.f32 %v2713_v18, %v693_v5  ;;  %v822_v22 = vmul.f32 %v2719_v25, %v693_v5  ;;  %v270_v25 = vld [vmem:[%s2577_s7 + $0x6] sm:$0x3] }
  0xf9   : > { %v3042_v33 = vrot.slane %v270_v25, %v2535_v57 }
  0xfa   : > { %v853_v12 = vadd.f32 %v821_v45, %v653_v14  ;;  %v854_v62 = vadd.f32 %v822_v22, %v654_v52  ;;  %v1285_v52 = vadd.f32 %v2994_v3, %v2991_v48  ;;  %v3797_v45 = vld [vmem:[#allocation17_spill] sm:$0xff] }
  0xfb   : > { %v709_v51 = vpop.permute.xlu1 %708  ;;  %3795 = vst [vmem:[#allocation18_spill] sm:$0xff] %v3042_v33 }
  0xfc   : > { %v830_v15 = vmul.f32 %v2681_v21, %v709_v51  ;;  %v3030_v58 = vadd.f32 %v2794_v16, %v853_v12  ;;  %v3033_v18 = vadd.f32 %v2797_v4, %v854_v62  ;;  %v3045_v16 = vrot.slane %v270_v25, %v2540_v59 }
  0xfd   : > { %v631_v59 = vmul.f32 %v2723_v36, %v3797_v45  ;;  %v831_v12 = vmul.f32 %v3800_v54, %v3799_v47  ;;  %v3803_v45 = vld [vmem:[#allocation21_spill] sm:$0xff] }
  0xfe   : > { %v862_v23 = vadd.f32 %v830_v15, %v2814_v9  ;;  %3796 = vst [vmem:[#allocation19_spill] sm:$0xff] %v3045_v16  ;;  %v1294_v9 = vadd.f32 %v3045_v16, %v3042_v33 }
  0xff   : > { %v729_v14 = vpop.permute.xlu1 %728 }
 0x100   : > { %v839_v49 = vmul.f32 %v3023_v27, %v729_v14  ;;  %v840_v21 = vmul.f32 %v3027_v38, %v729_v14 }
 0x102   : > { %v871_v60 = vadd.f32 %v839_v49, %v671_v39  ;;  %v872_v4 = vadd.f32 %v840_v21, %v672_v46  ;;  %v3798_v46 = vld [vmem:[#allocation11_spill] sm:$0xff]  ;;  %v3802_v21 = vld [vmem:[#allocation4_spill] sm:$0xff] }
 0x103   : > { %v733_v41 = vpop.permute.xlu1 %732  ;;  %v463_v22 = vmul.f32 %v2738_v29, %v3798_v46 }
 0x104   : > { %v842_v31 = vmul.f32 %v3027_v38, %v733_v41  ;;  %1286 = vadd.xlane.f32.xlu1 %v1285_v52  ;;  %v3051_v5 = vadd.f32 %v2809_v6, %v871_v60  ;;  %v3054_v56 = vadd.f32 %v2812_v11, %v872_v4  ;;  %v3801_v52 = vld [vmem:[#allocation3_spill] sm:$0xff] }
 0x105   : > { %v663_v15 = vadd.f32 %v631_v59, %v463_v22  ;;  %v646_v59 = vmul.f32 %v2823_v30, %v3803_v45  ;;  %v3804_v22 = vld [vmem:[#allocation14_spill] sm:$0xff] }
 0x106   : > { %v874_v57 = vadd.f32 %v842_v31, %v2869_v13  ;;  %v3807_v30 = vld [vmem:[#allocation34_spill] sm:$0xff] }
 0x107   : > { %v863_v14 = vadd.f32 %v831_v12, %v663_v15 }
 0x108   : > { %v905_v39 = vpop.permute.xlu1 %904  ;;  %1295 = vadd.xlane.f32.xlu1 %v1294_v9 }
 0x109   : > { %v1027_v62 = vmul.f32 %v3786_v55, %v905_v39  ;;  %v1028_v6 = vmul.f32 %v3787_v24, %v905_v39 }
 0x10b   : > { %v3066_v11 = vadd.f32 %v1027_v62, %v2953_v35  ;;  %v3069_v13 = vadd.f32 %v1028_v6, %v2955_v40  ;;  %v3805_v6 = vld [vmem:[#allocation31_spill] sm:$0xff] }
 0x10c   : > { %v913_v25 = vpop.permute.xlu1 %912  ;;  %v629_v15 = vmul.f32 %v2867_v37, %v3805_v6  ;;  %v3810_v37 = vld [vmem:[#allocation27_spill] sm:$0xff] }
 0x10d   : > { %v1031_v49 = vmul.f32 %v3801_v52, %v913_v25  ;;  %v1032_v60 = vmul.f32 %v3802_v21, %v913_v25 }
 0x10f   : > { %v3073_v4 = vadd.f32 %v1031_v49, %v863_v14  ;;  %v3076_v31 = vadd.f32 %v1032_v60, %v2923_v28  ;;  %v3806_v14 = vld [vmem:[#allocation33_spill] sm:$0xff]  ;;  %v3808_v60 = vld [vmem:[#allocation24_spill] sm:$0xff] }
 0x111   : > { %v369_v9 = vpop.permute.xlu1 %368 }
 0x112   : > { %v478_v35 = vmul.f32 %v2829_v44, %v369_v9 }
 0x114   : > { %v3081_v39 = vadd.f32 %v646_v59, %v478_v35  ;;  %v461_v59 = vmul.f32 %v2879_v20, %v3808_v60  ;;  %v3809_v35 = vld [vmem:[#allocation32_spill] sm:$0xff] }
 0x116   : > { %v725_v40 = vpop.permute.xlu1 %724 }
 0x117   : > { %v837_v46 = vmul.f32 %v3800_v54, %v725_v40  ;;  %v838_v47 = vmul.f32 %v3804_v22, %v725_v40  ;;  %v635_v40 = vmul.f32 %v2723_v36, %v3809_v35  ;;  %v661_v22 = vadd.f32 %v629_v15, %v461_v59  ;;  %v3812_v36 = vld [vmem:[#allocation35_spill] sm:$0xff] }
 0x119   : > { %v869_v12 = vadd.f32 %v837_v46, %v669_v7  ;;  %v870_v62 = vadd.f32 %v838_v47, %v670_v61  ;;  %v829_v7 = vmul.f32 %v2892_v10, %v709_v51  ;;  %v467_v46 = vmul.f32 %v2738_v29, %v3810_v37  ;;  %v3811_v47 = vld [vmem:[#allocation9_spill] sm:$0xff] }
 0x11a   : > { %v737_v28 = vpop.permute.xlu1 %736  ;;  %v641_v10 = vmul.f32 %v2889_v19, %v3812_v36 }
 0x11b   : > { %v844_v25 = vmul.f32 %v3027_v38, %v737_v28  ;;  %v3089_v49 = vadd.f32 %v3806_v14, %v869_v12  ;;  %v3092_v44 = vadd.f32 %v3807_v30, %v870_v62  ;;  %v835_v12 = vmul.f32 %v3800_v54, %v3811_v47  ;;  %v3816_v47 = vld [vmem:[#allocation6_spill] sm:$0xff] }
 0x11c   : > { %v667_v6 = vadd.f32 %v635_v40, %v467_v46  ;;  %v861_v14 = vadd.f32 %v829_v7, %v661_v22  ;;  %v841_v54 = vmul.f32 %v3023_v27, %v733_v41  ;;  %v3814_v40 = vld [vmem:[#allocation38_spill] sm:$0xff]  ;;  %v3815_v46 = vld [vmem:[#allocation5_spill] sm:$0xff] }
 0x11d   : > { %v3100_v61 = vadd.f32 %v844_v25, %v3000_v50  ;;  %v3813_v25 = vld [vmem:[#allocation28_spill] sm:$0xff] }
 0x11e   : > { %v473_v29 = vmul.f32 %v2901_v0, %v3813_v25  ;;  %v867_v60 = vadd.f32 %v835_v12, %v667_v6 }
 0x11f   : > { %v909_v62 = vpop.permute.xlu1 %908 }
 0x120   : > { %v1029_v20 = vmul.f32 %v3786_v55, %v909_v62  ;;  %v1030_v30 = vmul.f32 %v3787_v24, %v909_v62  ;;  %v673_v35 = vadd.f32 %v641_v10, %v473_v29  ;;  %v477_v29 = vmul.f32 %v2901_v0, %v369_v9 }
 0x122   : > { %v3110_v51 = vadd.f32 %v1029_v20, %v861_v14  ;;  %v3112_v50 = vadd.f32 %v1030_v30, %v862_v23  ;;  %v873_v23 = vadd.f32 %v841_v54, %v673_v35 }
 0x123   : > { %v921_v15 = vpop.permute.xlu1 %920 }
 0x124   : > { %v1035_v59 = vmul.f32 %v3801_v52, %v921_v15  ;;  %v1036_v55 = vmul.f32 %v3802_v21, %v921_v15  ;;  %v1123_v52 = vpop.permute.xlu0 %1122  ;;  %v3819_v15 = vld [vmem:[#allocation12_spill] sm:$0xff] }
 0x125   : > { %v3141_v36 = vadd.f32 %v1123_v52, %v2981_v32  ;;  %v3820_v32 = vld [vmem:[#allocation13_spill] sm:$0xff] }
 0x126   : > { %v3119_v24 = vadd.f32 %v1035_v59, %v867_v60  ;;  %v3122_v7 = vadd.f32 %v1036_v55, %v3814_v40 }
 0x127   : > { %v933_v37 = vpop.permute.xlu1 %932  ;;  %3817 = vst [vmem:[#allocation22_spill] sm:$0xff] %v3141_v36 }
 0x128   : > { %v1041_v22 = vmul.f32 %v3815_v46, %v933_v37  ;;  %v1042_v62 = vmul.f32 %v3816_v47, %v933_v37 }
 0x12a   : > { %v3126_v14 = vadd.f32 %v1041_v22, %v873_v23  ;;  %v3128_v41 = vadd.f32 %v1042_v62, %v874_v57  ;;  %v3144_v57 = vadd.f32 %v1123_v52, %v2984_v8  ;;  %v645_v8 = vmul.f32 %v2889_v19, %v3803_v45 }
 0x12b   : > { %v643_v23 = vmul.f32 %v2889_v19, %v3793_v26  ;;  %v843_v45 = vmul.f32 %v3023_v27, %v737_v28 }
 0x12c   : > { %v1103_v12 = vpop.permute.xlu1 %1102  ;;  %3818 = vst [vmem:[#allocation20_spill] sm:$0xff] %v3144_v57  ;;  %v1409_v9 = vmul.f32 %v3820_v32, %v3144_v57  ;;  %v677_v35 = vadd.f32 %v645_v8, %v477_v29 }
 0x12d   : > { %v3131_v21 = vadd.f32 %v1103_v12, %v2941_v34  ;;  %v3134_v6 = vadd.f32 %v1103_v12, %v2943_v43  ;;  %v3821_v12 = vld [vmem:[#allocation36_spill] sm:$0xff] }
 0x12f   : > { %v1406_v20 = vmul.f32 %v2991_v48, %v3131_v21  ;;  %v1407_v30 = vmul.f32 %v2994_v3, %v3134_v6 }
 0x130   : > { %v1118_v10 = vpop.permute.xlu1 %1117 }
 0x131   : > { %v3147_v25 = vadd.f32 %v1118_v10, %v2967_v42  ;;  %v3150_v34 = vadd.f32 %v1118_v10, %v2970_v63  ;;  %v1414_v43 = vadd.f32 %v1407_v30, %v1406_v20  ;;  %v475_v42 = vmul.f32 %v2901_v0, %v2988_v1  ;;  %v3822_v10 = vld [vmem:[#allocation37_spill] sm:$0xff] }
 0x132   : > { %v1408_v63 = vmul.f32 %v3819_v15, %v3141_v36 }
 0x133   : > { %1415 = vadd.xlane.f32.xlu0 %v1414_v43  ;;  %v1312_v54 = vmul.f32 %v3819_v15, %v3147_v25  ;;  %v1313_v60 = vmul.f32 %v3820_v32, %v3150_v34  ;;  %v675_v22 = vadd.f32 %v643_v23, %v475_v42  ;;  %v3827_v23 = vld [vmem:[#allocation29_spill] sm:$0xff] }
 0x134   : > { %v1417_v62 = vadd.f32 %v1409_v9, %v1408_v63 }
 0x135   : > { %v741_v59 = vpop.permute.xlu1 %740  ;;  %v1321_v55 = vadd.f32 %v1313_v60, %v1312_v54  ;;  %v875_v8 = vadd.f32 %v843_v45, %v675_v22 }
 0x136   : > { %v845_v40 = vmul.f32 %v3023_v27, %v741_v59  ;;  %v846_v37 = vmul.f32 %v3027_v38, %v741_v59 }
 0x137   : > { %1322 = vadd.xlane.f32.xlu1 %v1321_v55 }
 0x138   : > { %v877_v0 = vadd.f32 %v845_v40, %v677_v35  ;;  %v878_v1 = vadd.f32 %v846_v37, %v3081_v39  ;;  %v1128_v37 = vpop.permute.xlu0 %1127 }
 0x13a   : > { %v3172_v52 = vadd.f32 %v3821_v12, %v877_v0  ;;  %v3175_v43 = vadd.f32 %v3822_v10, %v878_v1  ;;  %v937_v29 = vpop.permute.xlu1 %936  ;;  %v3210_v12 = vadd.f32 %v1128_v37, %v3066_v11  ;;  %v3213_v10 = vadd.f32 %v1128_v37, %v3069_v13 }
 0x13b   : > { %v1043_v38 = vmul.f32 %v3815_v46, %v937_v29  ;;  %v1044_v19 = vmul.f32 %v3816_v47, %v937_v29  ;;  %1418 = vadd.xlane.f32.xlu1 %v1417_v62  ;;  %v3825_v46 = vld [vmem:[#allocation15_spill] sm:$0xff]  ;;  %v3826_v47 = vld [vmem:[#allocation16_spill] sm:$0xff]  ;;  %v1432_v62 = vmul.f32 %v1408_v63, %v3141_v36 }
 0x13c   : > { %3831 = vst [vmem:[#allocation23_spill] sm:$0xff] %v3210_v12  ;;  %3832 = vst [vmem:[#allocation3_spill] sm:$0xff] %v3213_v10  ;;  %v1504_v13 = vmul.f32 %v3819_v15, %v3210_v12 }
 0x13d   : > { %v3179_v26 = vadd.f32 %v1043_v38, %v875_v8  ;;  %v3182_v27 = vadd.f32 %v1044_v19, %v3100_v61  ;;  %v1336_v61 = vmul.f32 %v1312_v54, %v3147_v25  ;;  %v1433_v54 = vmul.f32 %v1409_v9, %v3144_v57  ;;  %v3833_v38 = vld [vmem:[#allocation25_spill] sm:$0xff] }
 0x13e   : > { %v1431_v8 = vmul.f32 %v1407_v30, %v3134_v6 }
 0x13f   : > { %v1108_v39 = vpop.permute.xlu1 %1107  ;;  %1343 = vadd.xlane.f32.xlu1 %v3016_v17  ;;  %v3829_v17 = vld [vmem:[#allocation30_spill] sm:$0xff]  ;;  %v1441_v9 = vadd.f32 %v1433_v54, %v1432_v62 }
 0x140   : > { %v3218_v19 = vadd.f32 %v1108_v39, %v3833_v38 }
 0x143   : > { %v1138_v28 = vpop.permute.xlu1 %1137 }
 0x144   : > { %v3186_v42 = vadd.f32 %v1138_v28, %v3073_v4  ;;  %v3189_v59 = vadd.f32 %v1138_v28, %v3076_v31  ;;  %v1337_v31 = vmul.f32 %v1313_v60, %v3150_v34  ;;  %v1430_v60 = vmul.f32 %v1406_v20, %v3131_v21  ;;  %v3834_v28 = vld [vmem:[#allocation26_spill] sm:$0xff] }
 0x145   : > { %v1502_v20 = vmul.f32 %v2991_v48, %v3218_v19 }
 0x146   : > { %3823 = vst [vmem:[#allocation10_spill] sm:$0xff] %v3186_v42  ;;  %3824 = vst [vmem:[#allocation17_spill] sm:$0xff] %v3189_v59  ;;  %v1314_v55 = vmul.f32 %v3825_v46, %v3186_v42  ;;  %v1315_v35 = vmul.f32 %v3826_v47, %v3189_v59  ;;  %v1345_v63 = vadd.f32 %v1337_v31, %v1336_v61 }
 0x147   : > { %v1143_v40 = vpop.permute.xlu1 %1142  ;;  %v1438_v37 = vadd.f32 %v1431_v8, %v1430_v60  ;;  %v1148_v8 = vpop.permute.xlu0 %1147 }
 0x148   : > { %v3197_v45 = vadd.f32 %v1143_v40, %v3827_v23  ;;  %v3200_v0 = vadd.f32 %v1143_v40, %v3829_v17  ;;  %v1324_v4 = vadd.f32 %v1315_v35, %v1314_v55  ;;  %v3221_v40 = vadd.f32 %v1108_v39, %v3834_v28 }
 0x149   : > { %v1505_v39 = vmul.f32 %v3820_v32, %v3213_v10  ;;  %v1338_v61 = vmul.f32 %v1314_v55, %v3186_v42  ;;  %v1339_v17 = vmul.f32 %v1315_v35, %v3189_v59  ;;  %v3244_v35 = vadd.f32 %v1148_v8, %v3119_v24 }
 0x14a   : > { %3828 = vst [vmem:[#allocation11_spill] sm:$0xff] %v3197_v45  ;;  %3830 = vst [vmem:[#allocation39_spill] sm:$0xff] %v3200_v0  ;;  %1325 = vadd.xlane.f32.xlu0 %v1324_v4  ;;  %v1410_v1 = vmul.f32 %v3825_v46, %v3197_v45  ;;  %v1411_v22 = vmul.f32 %v3826_v47, %v3200_v0  ;;  %v1503_v30 = vmul.f32 %v2994_v3, %v3221_v40 }
 0x14b   : > { %v1113_v29 = vpop.permute.xlu1 %1112  ;;  %v1513_v60 = vadd.f32 %v1505_v39, %v1504_v13 }
 0x14c   : > { %v1420_v23 = vadd.f32 %v1411_v22, %v1410_v1  ;;  %v1510_v54 = vadd.f32 %v1503_v30, %v1502_v20 }
 0x14e   : > { %1346 = vadd.xlane.f32.xlu0 %v1345_v63  ;;  %1421 = vadd.xlane.f32.xlu1 %v1420_v23  ;;  %v1434_v63 = vmul.f32 %v1410_v1, %v3197_v45  ;;  %v1527_v1 = vmul.f32 %v1503_v30, %v3221_v40 }
 0x14f   : > { %v1133_v11 = vpop.permute.xlu1 %1132 }
 0x150   : > { %v3277_v30 = vadd.f32 %v1133_v11, %v3112_v50 }
 0x152   : > { %1439 = vadd.xlane.f32.xlu0 %v1438_v37  ;;  %1442 = vadd.xlane.f32.xlu1 %v1441_v9  ;;  %3840 = vst [vmem:[#allocation34_spill] sm:$0xff] %v3277_v30 }
 0x153   : > { %v1158_v4 = vpop.permute.xlu1 %1157 }
 0x154   : > { %v3234_v31 = vadd.f32 %v1158_v4, %v3051_v5  ;;  %v3237_v62 = vadd.f32 %v1158_v4, %v3054_v56  ;;  %v3247_v5 = vadd.f32 %v1148_v8, %v3122_v7  ;;  %v1348_v56 = vadd.f32 %v1339_v17, %v1338_v61 }
 0x155   : > { %v1435_v4 = vmul.f32 %v1411_v22, %v3200_v0  ;;  %v1526_v61 = vmul.f32 %v1502_v20, %v3218_v19  ;;  %v3268_v22 = vadd.f32 %v1113_v29, %v3030_v58  ;;  %v3271_v17 = vadd.f32 %v1113_v29, %v3033_v18 }
 0x156   : > { %3835 = vst [vmem:[#allocation4_spill] sm:$0xff] %v3234_v31  ;;  %3836 = vst [vmem:[#allocation21_spill] sm:$0xff] %v3237_v62  ;;  %1511 = vadd.xlane.f32.xlu0 %v1510_v54  ;;  %1514 = vadd.xlane.f32.xlu1 %v1513_v60  ;;  %v1316_v38 = vmul.f32 %v3042_v33, %v3234_v31  ;;  %v1317_v55 = vmul.f32 %v3045_v16, %v3237_v62 }
 0x157   : > { %v1163_v28 = vpop.permute.xlu1 %1162  ;;  %3837 = vst [vmem:[#allocation14_spill] sm:$0xff] %v3268_v22  ;;  %3838 = vst [vmem:[#allocation31_spill] sm:$0xff] %v3271_v17  ;;  %v1444_v60 = vadd.f32 %v1435_v4, %v1434_v63  ;;  %v3274_v20 = vadd.f32 %v1133_v11, %v3110_v51  ;;  %v1528_v8 = vmul.f32 %v1504_v13, %v3210_v12 }
 0x158   : > { %v3251_v23 = vadd.f32 %v1163_v28, %v3126_v14  ;;  %v3254_v9 = vadd.f32 %v1163_v28, %v3128_v41  ;;  %v1327_v37 = vadd.f32 %v1317_v55, %v1316_v38  ;;  %v1506_v14 = vmul.f32 %v3825_v46, %v3244_v35 }
 0x159   : > { %v1507_v41 = vmul.f32 %v3826_v47, %v3247_v5  ;;  %3839 = vst [vmem:[#allocation33_spill] sm:$0xff] %v3274_v20  ;;  %v1529_v28 = vmul.f32 %v1505_v39, %v3213_v10  ;;  %v1534_v58 = vadd.f32 %v1527_v1, %v1526_v61  ;;  %v1598_v18 = vmul.f32 %v2991_v48, %v3268_v22  ;;  %v1153_v39 = vpop.permute.xlu0 %1152 }
 0x15a   : > { %1328 = vadd.xlane.f32.xlu0 %v1327_v37  ;;  %1349 = vadd.xlane.f32.xlu1 %v1348_v56  ;;  %v1412_v24 = vmul.f32 %v3042_v33, %v3251_v23  ;;  %v1413_v7 = vmul.f32 %v3045_v16, %v3254_v9  ;;  %v1599_v29 = vmul.f32 %v2994_v3, %v3271_v17 }
 0x15b   : > { %v1516_v56 = vadd.f32 %v1507_v41, %v1506_v14  ;;  %v1168_v63 = vpop.permute.xlu1 %1167  ;;  %v1340_v51 = vmul.f32 %v1316_v38, %v3234_v31  ;;  %v1341_v50 = vmul.f32 %v1317_v55, %v3237_v62  ;;  %v1600_v11 = vmul.f32 %v3819_v15, %v3274_v20 }
 0x15c   : > { %v1423_v54 = vadd.f32 %v1413_v7, %v1412_v24  ;;  %v1601_v13 = vmul.f32 %v3820_v32, %v3277_v30  ;;  %v3292_v37 = vadd.f32 %v1168_v63, %v3179_v26  ;;  %v3295_v4 = vadd.f32 %v1168_v63, %v3182_v27 }
 0x15d   : > { %v1537_v61 = vadd.f32 %v1529_v28, %v1528_v8  ;;  %v1606_v1 = vadd.f32 %v1599_v29, %v1598_v18  ;;  %v3298_v38 = vadd.f32 %v1153_v39, %v3089_v49  ;;  %v3301_v55 = vadd.f32 %v1153_v39, %v3092_v44  ;;  %v1173_v63 = vpop.permute.xlu0 %1172 }
 0x15e   : > { %1424 = vadd.xlane.f32.xlu0 %v1423_v54  ;;  %1445 = vadd.xlane.f32.xlu1 %v1444_v60  ;;  %3841 = vst [vmem:[#allocation24_spill] sm:$0xff] %v3292_v37  ;;  %3842 = vst [vmem:[#allocation32_spill] sm:$0xff] %v3295_v4  ;;  %v1609_v54 = vadd.f32 %v1601_v13, %v1600_v11  ;;  %v1351_v60 = vadd.f32 %v1341_v50, %v1340_v51 }
 0x15f   : > { %3843 = vst [vmem:[#allocation27_spill] sm:$0xff] %v3298_v38  ;;  %3844 = vst [vmem:[#allocation9_spill] sm:$0xff] %v3301_v55  ;;  %v1437_v26 = vmul.f32 %v1413_v7, %v3254_v9  ;;  %v1508_v27 = vmul.f32 %v3042_v33, %v3292_v37  ;;  %v1509_v8 = vmul.f32 %v3045_v16, %v3295_v4 }
 0x160   : > { %v1530_v49 = vmul.f32 %v1506_v14, %v3244_v35  ;;  %v1531_v28 = vmul.f32 %v1507_v41, %v3247_v5  ;;  %v1602_v44 = vmul.f32 %v3825_v46, %v3298_v38  ;;  %v3316_v51 = vadd.f32 %v1173_v63, %v3172_v52 }
 0x161   : > { %v1519_v7 = vadd.f32 %v1509_v8, %v1508_v27  ;;  %v3319_v50 = vadd.f32 %v1173_v63, %v3175_v43  ;;  %v1624_v41 = vmul.f32 %v1600_v11, %v3274_v20  ;;  %v1533_v11 = vmul.f32 %v1509_v8, %v3295_v4  ;;  %v1290_v8 = vpop.xlane.xlu0 %1289 }
 0x162   : > { %1517 = vadd.xlane.f32.xlu0 %v1516_v56  ;;  %1535 = vadd.xlane.f32.xlu1 %v1534_v58  ;;  %v1436_v56 = vmul.f32 %v1412_v24, %v3251_v23  ;;  %v1603_v24 = vmul.f32 %v3826_v47, %v3301_v55  ;;  %3845 = vst [vmem:[#allocation35_spill] sm:$0xff] %v3316_v51 }
 0x163   : > { %3846 = vst [vmem:[#allocation28_spill] sm:$0xff] %v3319_v50  ;;  %v1540_v14 = vadd.f32 %v1531_v28, %v1530_v49  ;;  %v1605_v52 = vmul.f32 %v3045_v16, %v3319_v50 }
 0x164   : > { %v1447_v58 = vadd.f32 %v1437_v26, %v1436_v56  ;;  %v1612_v39 = vadd.f32 %v1603_v24, %v1602_v44  ;;  %v1532_v26 = vmul.f32 %v1508_v27, %v3292_v37 }
 0x166   : > { %1538 = vadd.xlane.f32.xlu0 %v1537_v61  ;;  %1607 = vadd.xlane.f32.xlu1 %v1606_v1  ;;  %v1625_v61 = vmul.f32 %v1601_v13, %v3277_v30  ;;  %v1622_v1 = vmul.f32 %v1598_v18, %v3268_v22  ;;  %v1626_v18 = vmul.f32 %v1602_v44, %v3298_v38 }
 0x167   : > { %v1543_v13 = vadd.f32 %v1533_v11, %v1532_v26 }
 0x168   : > { %v1633_v56 = vadd.f32 %v1625_v61, %v1624_v41 }
 0x16a   : > { %1610 = vadd.xlane.f32.xlu0 %v1609_v54  ;;  %1352 = vadd.xlane.f32.xlu1 %v1351_v60  ;;  %v1623_v54 = vmul.f32 %v1599_v29, %v3271_v17  ;;  %v1604_v60 = vmul.f32 %v3042_v33, %v3316_v51  ;;  %v1627_v29 = vmul.f32 %v1603_v24, %v3301_v55 }
 0x16c   : > { %v1630_v43 = vadd.f32 %v1623_v54, %v1622_v1  ;;  %v1615_v49 = vadd.f32 %v1605_v52, %v1604_v60  ;;  %v1628_v28 = vmul.f32 %v1604_v60, %v3316_v51 }
 0x16e   : > { %1448 = vadd.xlane.f32.xlu0 %v1447_v58  ;;  %1520 = vadd.xlane.f32.xlu1 %v1519_v7  ;;  %v1629_v58 = vmul.f32 %v1605_v52, %v3319_v50  ;;  %v1636_v7 = vadd.f32 %v1627_v29, %v1626_v18 }
 0x170   : > { %v1639_v63 = vadd.f32 %v1629_v58, %v1628_v28 }
 0x172   : > { %1541 = vadd.xlane.f32.xlu0 %v1540_v14  ;;  %1613 = vadd.xlane.f32.xlu1 %v1612_v39  ;;  %v1293_v39 = vpop.xlane.xlu0 %1292 }
 0x176   : > { %1631 = vadd.xlane.f32.xlu0 %v1630_v43  ;;  %1634 = vadd.xlane.f32.xlu1 %v1633_v56 }
 0x17a   : > { %1544 = vadd.xlane.f32.xlu0 %v1543_v13  ;;  %1616 = vadd.xlane.f32.xlu1 %v1615_v49 }
 0x17e   : > { %1637 = vadd.xlane.f32.xlu0 %v1636_v7  ;;  %1640 = vadd.xlane.f32.xlu1 %v1639_v63 }
 0x17f   : > { %v1320_v44 = vpop.xlane.xlu0 %1319 }
 0x18d   : > { %v1287_v27 = vpop.xlane.xlu1 %1286 }
 0x18e   : > { %v1297_v43 = vadd.f32 %v1290_v8, %v1287_v27 }
 0x190   : > { %v1298_v52 = vadd.f32 %v1297_v43, %v1293_v39 }
 0x191   : > { %v1296_v14 = vpop.xlane.xlu1 %1295 }
 0x192   : > { %v1299_v18 = vadd.f32 %v1298_v52, %v1296_v14 }
 0x194   : > { %v3335_v49 = vadd.f32 1e-06, %v1299_v18 }
 0x196   : > { %3847 = vst [vmem:[#allocation38_spill] sm:$0xff] %v3335_v49  ;;  %2164 = vrcp.f32 %v3335_v49 }
 0x1a3   : > { %v3338_v52 = vpop.eup %2164 }
 0x1bc   : > { %v1416_v24 = vpop.xlane.xlu0 %1415 }
 0x1c0   : > { %v1323_v41 = vpop.xlane.xlu1 %1322 }
 0x1c1   : > { %v1330_v16 = vadd.f32 %v1323_v41, %v1320_v44 }
 0x1c4   : > { %v1419_v61 = vpop.xlane.xlu1 %1418 }
 0x1c5   : > { %v1426_v8 = vadd.f32 %v1419_v61, %v1416_v24 }
 0x1c8   : > { %v1344_v1 = vpop.xlane.xlu1 %1343 }
 0x1d3   : > { %v1326_v54 = vpop.xlane.xlu0 %1325 }
 0x1d4   : > { %v1331_v27 = vadd.f32 %v1330_v16, %v1326_v54 }
 0x1d7   : > { %v1347_v60 = vpop.xlane.xlu0 %1346  ;;  %v1422_v56 = vpop.xlane.xlu1 %1421 }
 0x1d8   : > { %v1354_v32 = vadd.f32 %v1347_v60, %v1344_v1  ;;  %v1427_v14 = vadd.f32 %v1426_v8, %v1422_v56 }
 0x1db   : > { %v1440_v26 = vpop.xlane.xlu0 %1439  ;;  %v1443_v11 = vpop.xlane.xlu1 %1442 }
 0x1dc   : > { %v1450_v50 = vadd.f32 %v1443_v11, %v1440_v26 }
 0x1df   : > { %v1512_v29 = vpop.xlane.xlu0 %1511  ;;  %v1515_v13 = vpop.xlane.xlu1 %1514 }
 0x1e0   : > { %v1522_v56 = vadd.f32 %v1515_v13, %v1512_v29 }
 0x1e3   : > { %v1329_v28 = vpop.xlane.xlu0 %1328  ;;  %v1350_v58 = vpop.xlane.xlu1 %1349 }
 0x1e4   : > { %v1332_v46 = vadd.f32 %v1331_v27, %v1329_v28  ;;  %v1355_v15 = vadd.f32 %v1354_v32, %v1350_v58 }
 0x1e6   : > { %v1333_v18 = vmul.f32 %v3338_v52, %v1332_v46 }
 0x1e7   : > { %v1425_v7 = vpop.xlane.xlu0 %1424  ;;  %v1446_v63 = vpop.xlane.xlu1 %1445 }
 0x1e8   : > { %v1428_v3 = vadd.f32 %v1427_v14, %v1425_v7  ;;  %v1451_v44 = vadd.f32 %v1450_v50, %v1446_v63  ;;  %v1358_v16 = vmul.f32 %v1333_v18, %v1333_v18  ;;  %v1365_v50 = vsub.f32 %v3004_v53, %v1333_v18 }
 0x1e9   : > { %v1367_v13 = vsub.f32 %v3150_v34, %v1333_v18  ;;  %v1368_v8 = vsub.f32 %v3186_v42, %v1333_v18  ;;  %v1369_v14 = vsub.f32 %v3189_v59, %v1333_v18 }
 0x1ea   : > { %v1429_v41 = vmul.f32 %v3338_v52, %v1428_v3  ;;  %v1364_v3 = vsub.f32 %v3002_v2, %v1333_v18 }
 0x1eb   : > { %v1518_v33 = vpop.xlane.xlu0 %1517  ;;  %v1536_v47 = vpop.xlane.xlu1 %1535  ;;  %v1376_v59 = vmul.f32 %v1368_v8, %v1368_v8  ;;  %v1377_v42 = vmul.f32 %v1369_v14, %v1369_v14 }
 0x1ec   : > { %v1454_v32 = vmul.f32 %v1429_v41, %v1429_v41  ;;  %v1523_v27 = vadd.f32 %v1522_v56, %v1518_v33  ;;  %v1370_v33 = vsub.f32 %v3234_v31, %v1333_v18 }
 0x1ee   : > { %v1378_v31 = vmul.f32 %v1370_v33, %v1370_v33 }
 0x1ef   : > { %v1539_v39 = vpop.xlane.xlu0 %1538  ;;  %v1608_v43 = vpop.xlane.xlu1 %1607 }
 0x1f3   : > { %v1611_v48 = vpop.xlane.xlu0 %1610  ;;  %v1353_v49 = vpop.xlane.xlu1 %1352 }
 0x1f4   : > { %v1356_v51 = vadd.f32 %v1355_v15, %v1353_v49 }
 0x1f6   : > { %v1357_v61 = vmul.f32 %v3338_v52, %v1356_v51  ;;  %v1366_v51 = vsub.f32 %v3147_v25, %v1333_v18 }
 0x1f7   : > { %v1449_v24 = vpop.xlane.xlu0 %1448  ;;  %v1521_v54 = vpop.xlane.xlu1 %1520 }
 0x1f8   : > { %v1359_v1 = vsub.f32 %v1357_v61, %v1358_v16  ;;  %v1452_v60 = vadd.f32 %v1451_v44, %v1449_v24  ;;  %v1524_v49 = vadd.f32 %v1523_v27, %v1521_v54  ;;  %v1546_v44 = vadd.f32 %v1539_v39, %v1536_v47 }
 0x1f9   : > { %v1618_v16 = vadd.f32 %v1611_v48, %v1608_v43  ;;  %v1371_v24 = vsub.f32 %v3237_v62, %v1333_v18  ;;  %v1374_v56 = vmul.f32 %v1366_v51, %v1366_v51  ;;  %v1460_v39 = vsub.f32 %v3131_v21, %v1429_v41 }
 0x1fa   : > { %v1360_v28 = vadd.f32 1e-06, %v1359_v1  ;;  %v1453_v46 = vmul.f32 %v3338_v52, %v1452_v60  ;;  %v1372_v1 = vmul.f32 %v1364_v3, %v1364_v3  ;;  %v1373_v60 = vmul.f32 %v1365_v50, %v1365_v50 }
 0x1fb   : > { %v1542_v58 = vpop.xlane.xlu0 %1541  ;;  %v1614_v7 = vpop.xlane.xlu1 %1613  ;;  %v3353_v54 = vmul.f32 %v3338_v52, %v1524_v49  ;;  %v1461_v43 = vsub.f32 %v3134_v6, %v1429_v41  ;;  %v1462_v18 = vsub.f32 %v3141_v36, %v1429_v41  ;;  %v1463_v3 = vsub.f32 %v3144_v57, %v1429_v41 }
 0x1fc   : > { %v1380_v26 = vmul.f32 2.0, %v1360_v28  ;;  %v1455_v15 = vsub.f32 %v1453_v46, %v1454_v32  ;;  %v1547_v46 = vadd.f32 %v1546_v44, %v1542_v58  ;;  %v1619_v32 = vadd.f32 %v1618_v16, %v1614_v7 }
 0x1fd   : > { %v1464_v50 = vsub.f32 %v3197_v45, %v1429_v41  ;;  %v1465_v58 = vsub.f32 %v3200_v0, %v1429_v41  ;;  %v1550_v49 = vmul.f32 %v3353_v54, %v3353_v54  ;;  %v1379_v33 = vmul.f32 %v1371_v24, %v1371_v24 }
 0x1fe   : > { %2166 = vrcp.f32 %v1380_v26  ;;  %v1456_v11 = vadd.f32 1e-06, %v1455_v15  ;;  %v1375_v15 = vmul.f32 %v1367_v13, %v1367_v13  ;;  %v1466_v13 = vsub.f32 %v3251_v23, %v1429_v41 }
 0x1ff   : > { %v1632_v63 = vpop.xlane.xlu0 %1631  ;;  %v1635_v29 = vpop.xlane.xlu1 %1634  ;;  %v1467_v44 = vsub.f32 %v3254_v9, %v1429_v41  ;;  %v1473_v45 = vmul.f32 %v1465_v58, %v1465_v58  ;;  %v1556_v41 = vsub.f32 %v3218_v19, %v3353_v54 }
 0x200   : > { %v1476_v61 = vmul.f32 2.0, %v1456_v11  ;;  %v1642_v7 = vadd.f32 %v1635_v29, %v1632_v63  ;;  %v1470_v29 = vmul.f32 %v1462_v18, %v1462_v18 }
 0x201   : > { %v1475_v24 = vmul.f32 %v1467_v44, %v1467_v44 }
 0x202   : > { %2168 = vrcp.f32 %v1476_v61 }
 0x203   : > { %v1545_v27 = vpop.xlane.xlu0 %1544  ;;  %v1617_v26 = vpop.xlane.xlu1 %1616  ;;  %2170 = vlog2.f32 %v1456_v11  ;;  %v1474_v11 = vmul.f32 %v1466_v13, %v1466_v13  ;;  %v1558_v13 = vsub.f32 %v3210_v12, %v3353_v54 }
 0x204   : > { %v1548_v47 = vadd.f32 %v1547_v46, %v1545_v27  ;;  %v1620_v48 = vadd.f32 %v1619_v32, %v1617_v26  ;;  %v1468_v46 = vmul.f32 %v1460_v39, %v1460_v39  ;;  %v1469_v32 = vmul.f32 %v1461_v43, %v1461_v43 }
 0x205   : > { %2172 = vlog2.f32 %v1360_v28  ;;  %v1471_v27 = vmul.f32 %v1463_v3, %v1463_v3  ;;  %v1472_v26 = vmul.f32 %v1464_v50, %v1464_v50  ;;  %v1557_v39 = vsub.f32 %v3221_v40, %v3353_v54 }
 0x206   : > { %v1549_v51 = vmul.f32 %v3338_v52, %v1548_v47  ;;  %v3366_v8 = vmul.f32 %v3338_v52, %v1620_v48 }
 0x207   : > { %v1638_v14 = vpop.xlane.xlu0 %1637  ;;  %v1641_v63 = vpop.xlane.xlu1 %1640 }
 0x208   : > { %v1551_v16 = vsub.f32 %v1549_v51, %v1550_v49  ;;  %v1643_v61 = vadd.f32 %v1642_v7, %v1638_v14  ;;  %v1646_v48 = vmul.f32 %v3366_v8, %v3366_v8 }
 0x20a   : > { %v1552_v47 = vadd.f32 1e-06, %v1551_v16  ;;  %v1644_v0 = vadd.f32 %v1643_v61, %v1641_v63  ;;  %v1559_v61 = vsub.f32 %v3213_v10, %v3353_v54 }
 0x20b   : > { %v2167_v57 = vpop.eup %2166 }
 0x20c   : > { %2174 = vlog2.f32 %v1552_v47  ;;  %v1572_v28 = vmul.f32 2.0, %v1552_v47  ;;  %v1645_v43 = vmul.f32 %v3338_v52, %v1644_v0  ;;  %v1382_v18 = vmul.f32 %v2167_v57, %v1372_v1 }
 0x20d   : > { %v1383_v3 = vmul.f32 %v2167_v57, %v1373_v60  ;;  %v1384_v50 = vmul.f32 %v2167_v57, %v1374_v56  ;;  %v1385_v58 = vmul.f32 %v2167_v57, %v1375_v15  ;;  %v1386_v7 = vmul.f32 %v2167_v57, %v1376_v59 }
 0x20e   : > { %2176 = vrcp.f32 %v1572_v28  ;;  %v1647_v51 = vsub.f32 %v1645_v43, %v1646_v48  ;;  %v1387_v49 = vmul.f32 %v2167_v57, %v1377_v42  ;;  %v1388_v44 = vmul.f32 %v2167_v57, %v1378_v31 }
 0x20f   : > { %v2169_v14 = vpop.eup %2168  ;;  %v1389_v16 = vmul.f32 %v2167_v57, %v1379_v33  ;;  %v1560_v0 = vsub.f32 %v3244_v35, %v3353_v54  ;;  %v1561_v59 = vsub.f32 %v3247_v5, %v3353_v54  ;;  %v1239_v33 = vld [vmem:[%s3647_s0] sm:$0xff] }
 0x210   : > { %v1648_v52 = vadd.f32 1e-06, %v1647_v51  ;;  %v1478_v1 = vmul.f32 %v2169_v14, %v1468_v46  ;;  %v1479_v60 = vmul.f32 %v2169_v14, %v1469_v32  ;;  %v1480_v56 = vmul.f32 %v2169_v14, %v1470_v29  ;;  %v2171_v32 = vpop.eup %2170 }
 0x211   : > { %v1481_v42 = vmul.f32 %v2169_v14, %v1471_v27  ;;  %v1482_v15 = vmul.f32 %v2169_v14, %v1472_v26  ;;  %v1483_v63 = vmul.f32 %v2169_v14, %v1473_v45  ;;  %v1484_v31 = vmul.f32 %v2169_v14, %v1474_v11 }
 0x212   : > { %2178 = vlog2.f32 %v1648_v52  ;;  %v1668_v47 = vmul.f32 2.0, %v1648_v52  ;;  %v1485_v57 = vmul.f32 %v2169_v14, %v1475_v24  ;;  %v1486_v48 = vadd.f32 %v1478_v1, %v1382_v18  ;;  %v2173_v11 = vpop.eup %2172 }
 0x213   : > { %v1487_v28 = vadd.f32 %v1479_v60, %v1383_v3  ;;  %v1488_v43 = vadd.f32 %v1480_v56, %v1384_v50  ;;  %v1489_v46 = vadd.f32 %v1481_v42, %v1385_v58  ;;  %v1490_v51 = vadd.f32 %v1482_v15, %v1386_v7  ;;  %v3849_v15 = vld [vmem:[#allocation35_spill] sm:$0xff] }
 0x214   : > { %2180 = vrcp.f32 %v1668_v47  ;;  %v1491_v10 = vadd.f32 %v1483_v63, %v1387_v49  ;;  %v1492_v29 = vadd.f32 %v1484_v31, %v1388_v44  ;;  %v1493_v27 = vadd.f32 %v1485_v57, %v1389_v16 }
 0x215   : > { %v1562_v45 = vsub.f32 %v3292_v37, %v3353_v54  ;;  %v1563_v26 = vsub.f32 %v3295_v4, %v3353_v54  ;;  %v3391_v24 = vmul.f32 4.0, %v1239_v33  ;;  %v1564_v14 = vmul.f32 %v1556_v41, %v1556_v41 }
 0x216   : > { %v1565_v18 = vmul.f32 %v1557_v39, %v1557_v39  ;;  %v1458_v3 = vmul.f32 0.6931472, %v2171_v32  ;;  %v1652_v50 = vsub.f32 %v3268_v22, %v3366_v8  ;;  %v1653_v58 = vsub.f32 %v3271_v17, %v3366_v8 }
 0x217   : > { %3848 = vst [vmem:[#allocation5_spill] sm:$0xff] %v3391_v24  ;;  %v1654_v7 = vsub.f32 %v3274_v20, %v3366_v8  ;;  %v1566_v49 = vmul.f32 %v1558_v13, %v1558_v13  ;;  %v1567_v44 = vmul.f32 %v1559_v61, %v1559_v61  ;;  %v1568_v16 = vmul.f32 %v1560_v0, %v1560_v0  ;;  %v3850_v13 = vld [vmem:[#allocation28_spill] sm:$0xff] }
 0x218   : > { %v1569_v52 = vmul.f32 %v1561_v59, %v1561_v59  ;;  %v1362_v1 = vmul.f32 0.6931472, %v2173_v11  ;;  %v1570_v60 = vmul.f32 %v1562_v45, %v1562_v45  ;;  %v1571_v56 = vmul.f32 %v1563_v26, %v1563_v26 }
 0x219   : > { %v2175_v54 = vpop.eup %2174  ;;  %v1655_v41 = vsub.f32 %v3277_v30, %v3366_v8  ;;  %v1656_v39 = vsub.f32 %v3298_v38, %v3366_v8  ;;  %v1657_v42 = vsub.f32 %v3301_v55, %v3366_v8  ;;  %v1658_v63 = vsub.f32 %v3849_v15, %v3366_v8 }
 0x21a   : > { %v1659_v61 = vsub.f32 %v3850_v13, %v3366_v8  ;;  %v1459_v59 = vadd.f32 %v1458_v3, %v1362_v1  ;;  %v1660_v47 = vmul.f32 %v1652_v50, %v1652_v50  ;;  %v1661_v31 = vmul.f32 %v1653_v58, %v1653_v58 }
 0x21b   : > { %v2177_v0 = vpop.eup %2176  ;;  %v1662_v57 = vmul.f32 %v1654_v7, %v1654_v7  ;;  %v1554_v33 = vmul.f32 0.6931472, %v2175_v54  ;;  %v1663_v54 = vmul.f32 %v1655_v41, %v1655_v41 }
 0x21c   : > { %v1574_v32 = vmul.f32 %v2177_v0, %v1564_v14  ;;  %v1575_v45 = vmul.f32 %v2177_v0, %v1565_v18  ;;  %v1576_v26 = vmul.f32 %v2177_v0, %v1566_v49  ;;  %v1577_v11 = vmul.f32 %v2177_v0, %v1567_v44 }
 0x21d   : > { %v1578_v38 = vmul.f32 %v2177_v0, %v1568_v16  ;;  %v1579_v4 = vmul.f32 %v2177_v0, %v1569_v52  ;;  %v1580_v37 = vmul.f32 %v2177_v0, %v1570_v60  ;;  %v1581_v55 = vmul.f32 %v2177_v0, %v1571_v56 }
 0x21e   : > { %v1582_v17 = vadd.f32 %v1574_v32, %v1486_v48  ;;  %v1583_v22 = vadd.f32 %v1575_v45, %v1487_v28  ;;  %v1584_v15 = vadd.f32 %v1576_v26, %v1488_v43  ;;  %v1585_v36 = vadd.f32 %v1577_v11, %v1489_v46 }
 0x21f   : > { %v2179_v12 = vpop.eup %2178  ;;  %v1586_v8 = vadd.f32 %v1578_v38, %v1490_v51  ;;  %v1587_v13 = vadd.f32 %v1579_v4, %v1491_v10  ;;  %v1588_v3 = vadd.f32 %v1580_v37, %v1492_v29  ;;  %v1555_v50 = vadd.f32 %v1554_v33, %v1459_v59  ;;  %v3851_v38 = vld [vmem:[#allocation38_spill] sm:$0xff] }
 0x220   : > { %v1650_v58 = vmul.f32 0.6931472, %v2179_v12  ;;  %v1589_v7 = vadd.f32 %v1581_v55, %v1493_v27  ;;  %v1664_v18 = vmul.f32 %v1656_v39, %v1656_v39  ;;  %v1665_v49 = vmul.f32 %v1657_v42, %v1657_v42  ;;  %v3414_v55 = vld [vmem:[%s3648_s1] sm:$0xff] }
 0x221   : > { %v2181_v14 = vpop.eup %2180  ;;  %v1666_v44 = vmul.f32 %v1658_v63, %v1658_v63  ;;  %v1667_v16 = vmul.f32 %v1659_v61, %v1659_v61  ;;  %v1686_v10 = vmul.f32 0.125, %v3851_v38  ;;  %3852 = vst [vmem:[#allocation6_spill] sm:$0xff] %v3414_v55 }
 0x222   : > { %v1651_v52 = vadd.f32 %v1650_v58, %v1555_v50  ;;  %v1670_v1 = vmul.f32 %v2181_v14, %v1660_v47  ;;  %v1671_v60 = vmul.f32 %v2181_v14, %v1661_v31  ;;  %v1672_v48 = vmul.f32 %v2181_v14, %v1662_v57 }
 0x223   : > { %v1673_v28 = vmul.f32 %v2181_v14, %v1663_v54  ;;  %v1674_v43 = vmul.f32 %v2181_v14, %v1664_v18  ;;  %v1675_v56 = vmul.f32 %v2181_v14, %v1665_v49  ;;  %v1676_v46 = vmul.f32 %v2181_v14, %v1666_v44 }
 0x224   : > { %v1688_v37 = vadd.f32 %v3391_v24, %v1651_v52  ;;  %v1677_v12 = vmul.f32 %v2181_v14, %v1667_v16  ;;  %v1678_v4 = vadd.f32 %v1670_v1, %v1582_v17  ;;  %v1679_v51 = vadd.f32 %v1671_v60, %v1583_v22 }
 0x225   : > { %v1680_v29 = vadd.f32 %v1672_v48, %v1584_v15  ;;  %v1681_v27 = vadd.f32 %v1673_v28, %v1585_v36  ;;  %v1682_v41 = vadd.f32 %v1674_v43, %v1586_v8  ;;  %v1683_v42 = vadd.f32 %v1675_v56, %v1587_v13 }
 0x226   : > { %v1689_v39 = vmul.f32 %v1688_v37, %v1686_v10  ;;  %v1684_v63 = vadd.f32 %v1676_v46, %v1588_v3  ;;  %v1685_v61 = vadd.f32 %v1677_v12, %v1589_v7  ;;  %v1698_v33 = vadd.f32 7.3515177, %v1651_v52 }
 0x228   : > { %v1690_v0 = vsub.f32 %v3414_v55, %v1689_v39  ;;  %v1701_v15 = vmul.f32 0.5, %v1698_v33 }
 0x22a   : > { %v2123_v59 = vmul.f32 -0.01, %v1690_v0 }
 0x22c   : > { %v1693_v47 = vmul.f32 1.442695, %v2123_v59 }
 0x22e   : > { %2182 = vpow2.f32 %v1693_v47 }
 0x23b   : > { %v2183_v31 = vpop.eup %2182 }
 0x23c   : > { %v1695_v17 = vadd.f32 1.0, %v2183_v31 }
 0x23e   : > { %2184 = vrcp.f32 %v1695_v17 }
 0x24b   : > { %v2185_v57 = vpop.eup %2184 }
 0x24c   : > { %2186 = vlog2.f32 %v2185_v57 }
 0x259   : > { %v2187_v32 = vpop.eup %2186 }
 0x25a   : > { %v1700_v22 = vmul.f32 0.6931472, %v2187_v32 }
 0x25c   : > { %v1702_v36 = vsub.f32 %v1700_v22, %v1701_v15 }
 0x25e   : > { %1705 = vperm.xlu0 %2163, %v1702_v36  }
 0x2d9   : > { %v1706_v45 = vpop.permute.xlu0 %1705 }
 0x2da   : > { %v1708_v13 = vsub.f32 %v1706_v45, %v1678_v4  ;;  %v1709_v26 = vsub.f32 %v1706_v45, %v1679_v51  ;;  %v1710_v11 = vsub.f32 %v1706_v45, %v1680_v29  ;;  %v1711_v8 = vsub.f32 %v1706_v45, %v1681_v27 }
 0x2db   : > { %v1712_v3 = vsub.f32 %v1706_v45, %v1682_v41  ;;  %v1713_v50 = vsub.f32 %v1706_v45, %v1683_v42  ;;  %v1714_v58 = vsub.f32 %v1706_v45, %v1684_v63  ;;  %v1715_v18 = vsub.f32 %v1706_v45, %v1685_v61 }
 0x2dc   : > { %v1716_v7 = vmul.f32 1.442695, %v1708_v13  ;;  %v1718_v54 = vmul.f32 1.442695, %v1709_v26  ;;  %v1720_v14 = vmul.f32 1.442695, %v1710_v11 }
 0x2dd   : > { %v1722_v49 = vmul.f32 1.442695, %v1711_v8  ;;  %v1724_v44 = vmul.f32 1.442695, %v1712_v3  ;;  %v1726_v16 = vmul.f32 1.442695, %v1713_v50 }
 0x2de   : > { %2188 = vpow2.f32 %v1716_v7  ;;  %v1728_v52 = vmul.f32 1.442695, %v1714_v58  ;;  %v1730_v1 = vmul.f32 1.442695, %v1715_v18 }
 0x2df   : > { %2190 = vpow2.f32 %v1718_v54 }
 0x2e0   : > { %2192 = vpow2.f32 %v1720_v14 }
 0x2e1   : > { %2194 = vpow2.f32 %v1722_v49 }
 0x2e2   : > { %2196 = vpow2.f32 %v1724_v44 }
 0x2e3   : > { %2198 = vpow2.f32 %v1726_v16 }
 0x2e4   : > { %2200 = vpow2.f32 %v1728_v52 }
 0x2e5   : > { %2202 = vpow2.f32 %v1730_v1 }
 0x2eb   : > { %v3417_v60 = vpop.eup %2188 }
 0x2ec   : > { %v3419_v48 = vpop.eup %2190  ;;  %v1732_v28 = vrot.slane %v3417_v60, 4 }
 0x2ed   : > { %v3422_v43 = vpop.eup %2192  ;;  %v1738_v56 = vrot.slane %v3419_v48, 4 }
 0x2ee   : > { %v3425_v46 = vpop.eup %2194  ;;  %v1733_v38 = vadd.f32 %v3417_v60, %v1732_v28  ;;  %v1744_v10 = vrot.slane %v3422_v43, 4 }
 0x2ef   : > { %v3429_v37 = vpop.eup %2196  ;;  %v1739_v12 = vadd.f32 %v3419_v48, %v1738_v56  ;;  %v1750_v4 = vrot.slane %v3425_v46, 4 }
 0x2f0   : > { %v3433_v51 = vpop.eup %2198  ;;  %v1734_v29 = vrot.slane %v1733_v38, 2  ;;  %v1745_v27 = vadd.f32 %v3422_v43, %v1744_v10  ;;  %v1756_v41 = vrot.slane %v3429_v37, 4 }
 0x2f1   : > { %v3437_v39 = vpop.eup %2200  ;;  %v1740_v42 = vrot.slane %v1739_v12, 2  ;;  %v1751_v63 = vadd.f32 %v3425_v46, %v1750_v4  ;;  %v1762_v61 = vrot.slane %v3433_v51, 4 }
 0x2f2   : > { %v3441_v0 = vpop.eup %2202  ;;  %v1735_v59 = vadd.f32 %v1734_v29, %v1733_v38  ;;  %v1746_v47 = vrot.slane %v1745_v27, 2  ;;  %v1757_v31 = vadd.f32 %v3429_v37, %v1756_v41  ;;  %v1768_v17 = vrot.slane %v3437_v39, 4 }
 0x2f3   : > { %v1741_v57 = vadd.f32 %v1740_v42, %v1739_v12  ;;  %v1752_v33 = vrot.slane %v1751_v63, 2  ;;  %v1763_v32 = vadd.f32 %v3433_v51, %v1762_v61  ;;  %v1774_v22 = vrot.slane %v3441_v0, 4 }
 0x2f4   : > { %v1736_v15 = vrot.slane %v1735_v59, 1  ;;  %v1747_v36 = vadd.f32 %v1746_v47, %v1745_v27  ;;  %v1758_v45 = vrot.slane %v1757_v31, 2  ;;  %v1769_v13 = vadd.f32 %v3437_v39, %v1768_v17  ;;  %v3853_v17 = vld [vmem:[#allocation7_spill] sm:$0xff] }
 0x2f5   : > { %v1742_v26 = vrot.slane %v1741_v57, 1  ;;  %v1753_v11 = vadd.f32 %v1752_v33, %v1751_v63  ;;  %v1764_v8 = vrot.slane %v1763_v32, 2  ;;  %v1775_v3 = vadd.f32 %v3441_v0, %v1774_v22  ;;  %v3854_v22 = vld [vmem:[#allocation8_spill] sm:$0xff] }
 0x2f6   : > { %v1737_v50 = vadd.f32 %v1736_v15, %v1735_v59  ;;  %v1748_v58 = vrot.slane %v1747_v36, 1  ;;  %v1759_v7 = vadd.f32 %v1758_v45, %v1757_v31  ;;  %v1770_v54 = vrot.slane %v1769_v13, 2 }
 0x2f7   : > { %v1743_v14 = vadd.f32 %v1742_v26, %v1741_v57  ;;  %v1754_v18 = vrot.slane %v1753_v11, 1  ;;  %v1765_v49 = vadd.f32 %v1764_v8, %v1763_v32  ;;  %v1776_v44 = vrot.slane %v1775_v3, 2 }
 0x2f8   : > { %2204 = vrcp.f32 %v1737_v50  ;;  %v1749_v16 = vadd.f32 %v1748_v58, %v1747_v36  ;;  %v1760_v52 = vrot.slane %v1759_v7, 1  ;;  %v1771_v1 = vadd.f32 %v1770_v54, %v1769_v13 }
 0x2f9   : > { %2206 = vrcp.f32 %v1743_v14  ;;  %v1755_v28 = vadd.f32 %v1754_v18, %v1753_v11  ;;  %v1766_v56 = vrot.slane %v1765_v49, 1  ;;  %v1777_v38 = vadd.f32 %v1776_v44, %v1775_v3  ;;  %v3856_v3 = vld [vmem:[#allocation13_spill] sm:$0xff]  ;;  %v3857_v14 = vld [vmem:[#allocation15_spill] sm:$0xff] }
 0x2fa   : > { %2208 = vrcp.f32 %v1749_v16  ;;  %v1761_v10 = vadd.f32 %v1760_v52, %v1759_v7  ;;  %v1772_v12 = vrot.slane %v1771_v1, 1 }
 0x2fb   : > { %2210 = vrcp.f32 %v1755_v28  ;;  %v1767_v4 = vadd.f32 %v1766_v56, %v1765_v49  ;;  %v1778_v29 = vrot.slane %v1777_v38, 1  ;;  %v3858_v28 = vld [vmem:[#allocation16_spill] sm:$0xff]  ;;  %v3859_v56 = vld [vmem:[#allocation18_spill] sm:$0xff] }
 0x2fc   : > { %2212 = vrcp.f32 %v1761_v10  ;;  %v1773_v27 = vadd.f32 %v1772_v12, %v1771_v1  ;;  %v3860_v12 = vld [vmem:[#allocation19_spill] sm:$0xff] }
 0x2fd   : > { %2214 = vrcp.f32 %v1767_v4  ;;  %v1779_v41 = vadd.f32 %v1778_v29, %v1777_v38 }
 0x2fe   : > { %2216 = vrcp.f32 %v1773_v27 }
 0x2ff   : > { %2218 = vrcp.f32 %v1779_v41 }
 0x305   : > { %v2205_v42 = vpop.eup %2204 }
 0x306   : > { %v2207_v63 = vpop.eup %2206  ;;  %v1788_v61 = vmul.f32 %v2205_v42, %v3417_v60  ;;  %v3855_v60 = vld [vmem:[#allocation12_spill] sm:$0xff] }
 0x307   : > { %v2209_v59 = vpop.eup %2208  ;;  %v1789_v47 = vmul.f32 %v2207_v63, %v3419_v48  ;;  %v3862_v42 = vld [vmem:[#allocation4_spill] sm:$0xff] }
 0x308   : > { %v2211_v31 = vpop.eup %2210  ;;  %v3452_v57 = vmul.f32 %v1788_v61, %v3853_v17  ;;  %v1790_v33 = vmul.f32 %v2209_v59, %v3422_v43 }
 0x309   : > { %v2213_v32 = vpop.eup %2212  ;;  %v3456_v15 = vmul.f32 %v1789_v47, %v3854_v22  ;;  %v1791_v36 = vmul.f32 %v2211_v31, %v3425_v46 }
 0x30a   : > { %v2215_v45 = vpop.eup %2214  ;;  %v3461_v13 = vmul.f32 %v3452_v57, %v3131_v21  ;;  %v1798_v26 = vmul.f32 %v1790_v33, %v3855_v60  ;;  %v3466_v48 = vmul.f32 %v3452_v57, %v3218_v19  ;;  %v1792_v11 = vmul.f32 %v2213_v32, %v3429_v37  ;;  %v3866_v60 = vld [vmem:[#allocation20_spill] sm:$0xff] }
 0x30b   : > { %v2217_v43 = vpop.eup %2216  ;;  %v1804_v8 = vadd.f32 %v3456_v15, %v3452_v57  ;;  %v3473_v46 = vmul.f32 %v3456_v15, %v3134_v6  ;;  %v1799_v50 = vmul.f32 %v1791_v36, %v3856_v3  ;;  %v3478_v58 = vmul.f32 %v3456_v15, %v3221_v40  ;;  %v3865_v36 = vld [vmem:[#allocation22_spill] sm:$0xff] }
 0x30c   : > { %v2219_v7 = vpop.eup %2218  ;;  %v1793_v54 = vmul.f32 %v2215_v45, %v3433_v51  ;;  %v1800_v18 = vmul.f32 %v1792_v11, %v3857_v14  ;;  %v1794_v37 = vmul.f32 %v2217_v43, %v3437_v39  ;;  %v3485_v49 = vmul.f32 %v3452_v57, %v3002_v2 }
 0x30d   : > { %1805 = vadd.xlane.f32.xlu1 %v1804_v8  ;;  %v1883_v44 = vadd.f32 %v3473_v46, %v3461_v13  ;;  %v1807_v16 = vadd.f32 %v1799_v50, %v1798_v26  ;;  %v1937_v52 = vadd.f32 %v3478_v58, %v3466_v48  ;;  %v1795_v1 = vmul.f32 %v2219_v7, %v3441_v0  ;;  %v3867_v7 = vld [vmem:[#allocation23_spill] sm:$0xff] }
 0x30e   : > { %v1801_v51 = vmul.f32 %v1793_v54, %v3858_v28  ;;  %v3494_v38 = vmul.f32 %v1794_v37, %v3859_v56  ;;  %v3498_v39 = vmul.f32 %v3456_v15, %v3004_v53  ;;  %v1933_v10 = vmul.f32 %v1800_v18, %v3244_v35  ;;  %v3872_v56 = vld [vmem:[#allocation17_spill] sm:$0xff] }
 0x30f   : > { %1884 = vadd.xlane.f32.xlu0 %v1883_v44  ;;  %v3502_v4 = vmul.f32 %v1795_v1, %v3860_v12  ;;  %v3505_v29 = vmul.f32 %v1798_v26, %v3147_v25  ;;  %v3508_v0 = vmul.f32 %v1799_v50, %v3150_v34  ;;  %v3511_v27 = vmul.f32 %v1798_v26, %v3274_v20  ;;  %v3870_v44 = vld [vmem:[#allocation3_spill] sm:$0xff]  ;;  %v3871_v1 = vld [vmem:[#allocation10_spill] sm:$0xff] }
 0x310   : > { %v1810_v41 = vadd.f32 %v1801_v51, %v1800_v18  ;;  %v3515_v63 = vmul.f32 %v3494_v38, %v3862_v42  ;;  %v1881_v61 = vmul.f32 %v3494_v38, %v3251_v23  ;;  %v1829_v59 = vadd.f32 %v3498_v39, %v3485_v49 }
 0x311   : > { %3861 = vst [vmem:[#allocation36_spill] sm:$0xff] %v3511_v27  ;;  %1808 = vadd.xlane.f32.xlu1 %v1807_v16  ;;  %v3523_v47 = vmul.f32 %v3502_v4, %v3237_v62  ;;  %v1813_v31 = vadd.f32 %v3502_v4, %v3494_v38  ;;  %v1882_v17 = vmul.f32 %v3502_v4, %v3254_v9 }
 0x312   : > { %v1934_v33 = vmul.f32 %v1801_v51, %v3247_v5  ;;  %v3532_v32 = vadd.f32 %v3508_v0, %v3505_v29  ;;  %v3535_v22 = vmul.f32 %v1799_v50, %v3277_v30  ;;  %v1877_v45 = vmul.f32 %v1798_v26, %v3865_v36  ;;  %v3873_v30 = vld [vmem:[#allocation11_spill] sm:$0xff] }
 0x313   : > { %3863 = vst [vmem:[#allocation37_spill] sm:$0xff] %v3523_v47  ;;  %v1878_v11 = vmul.f32 %v1799_v50, %v3866_v60  ;;  %1938 = vadd.xlane.f32.xlu0 %v1937_v52  ;;  %v1838_v43 = vadd.f32 %v3523_v47, %v3515_v63  ;;  %v1892_v8 = vadd.f32 %v1882_v17, %v1881_v61 }
 0x314   : > { %3864 = vst [vmem:[#allocation29_spill] sm:$0xff] %v3535_v22  ;;  %v1943_v3 = vadd.f32 %v1934_v33, %v1933_v10  ;;  %v1931_v54 = vmul.f32 %v1798_v26, %v3867_v7  ;;  %v3544_v14 = vadd.f32 %v3535_v22, %v3511_v27  ;;  %v1932_v16 = vmul.f32 %v1799_v50, %v3870_v44  ;;  %v3874_v27 = vld [vmem:[#allocation39_spill] sm:$0xff] }
 0x315   : > { %v3546_v37 = vadd.f32 %v1878_v11, %v1877_v45  ;;  %v1825_v28 = vmul.f32 %v1800_v18, %v3871_v1  ;;  %1811 = vadd.xlane.f32.xlu1 %v1810_v41  ;;  %v1826_v12 = vmul.f32 %v1801_v51, %v3872_v56  ;;  %v1905_v55 = vmul.f32 %v1881_v61, %v3251_v23 }
 0x316   : > { %3868 = vst [vmem:[#allocation30_spill] sm:$0xff] %v3544_v14  ;;  %v1955_v52 = vmul.f32 %v1931_v54, %v3867_v7  ;;  %v1906_v24 = vmul.f32 %v1882_v17, %v3254_v9  ;;  %v1956_v26 = vmul.f32 %v1932_v16, %v3870_v44  ;;  %v1879_v22 = vmul.f32 %v1800_v18, %v3873_v30  ;;  %v3877_v9 = vld [vmem:[#allocation14_spill] sm:$0xff]  ;;  %v3878_v44 = vld [vmem:[#allocation31_spill] sm:$0xff] }
 0x317   : > { %3869 = vst [vmem:[#allocation25_spill] sm:$0xff] %v3546_v37  ;;  %v1880_v20 = vmul.f32 %v1801_v51, %v3874_v27  ;;  %v1957_v37 = vmul.f32 %v1933_v10, %v3244_v35  ;;  %1839 = vadd.xlane.f32.xlu0 %v1838_v43  ;;  %v3558_v50 = vadd.f32 %v1826_v12, %v1825_v28  ;;  %v3879_v35 = vld [vmem:[#allocation24_spill] sm:$0xff] }
 0x318   : > { %v3560_v41 = vadd.f32 %v1906_v24, %v1905_v55  ;;  %v1958_v7 = vmul.f32 %v1934_v33, %v3247_v5  ;;  %v3563_v47 = vadd.f32 %v1932_v16, %v1931_v54  ;;  %v1964_v23 = vadd.f32 %v1956_v26, %v1955_v52  ;;  %v3880_v43 = vld [vmem:[#allocation32_spill] sm:$0xff]  ;;  %v3881_v55 = vld [vmem:[#allocation27_spill] sm:$0xff]  ;;  %v3882_v52 = vld [vmem:[#allocation9_spill] sm:$0xff] }
 0x319   : > { %v1889_v61 = vadd.f32 %v1880_v20, %v1879_v22  ;;  %v1983_v17 = vmul.f32 %v3452_v57, %v3877_v9  ;;  %v1984_v62 = vmul.f32 %v3456_v15, %v3878_v44  ;;  %1814 = vadd.xlane.f32.xlu1 %v1813_v31  ;;  %v1935_v10 = vmul.f32 %v3494_v38, %v3879_v35 }
 0x31a   : > { %3875 = vst [vmem:[#allocation26_spill] sm:$0xff] %v3560_v41  ;;  %3876 = vst [vmem:[#allocation38_spill] sm:$0xff] %v3563_v47  ;;  %v1967_v14 = vadd.f32 %v1958_v7, %v1957_v37  ;;  %v1936_v24 = vmul.f32 %v3502_v4, %v3880_v43  ;;  %v1987_v5 = vmul.f32 %v1800_v18, %v3881_v55  ;;  %v3883_v18 = vld [vmem:[#allocation35_spill] sm:$0xff] }
 0x31b   : > { %v2007_v33 = vmul.f32 %v1983_v17, %v3877_v9  ;;  %v2008_v54 = vmul.f32 %v1984_v62, %v3878_v44  ;;  %v1991_v16 = vadd.f32 %v1984_v62, %v1983_v17  ;;  %v1988_v57 = vmul.f32 %v1801_v51, %v3882_v52  ;;  %1893 = vadd.xlane.f32.xlu0 %v1892_v8  ;;  %v3884_v62 = vld [vmem:[#allocation28_spill] sm:$0xff] }
 0x31c   : > { %v1959_v15 = vmul.f32 %v1935_v10, %v3879_v35  ;;  %v1960_v31 = vmul.f32 %v1936_v24, %v3880_v43  ;;  %v1946_v37 = vadd.f32 %v1936_v24, %v1935_v10  ;;  %v2011_v26 = vmul.f32 %v1987_v5, %v3881_v55 }
 0x31d   : > { %v2015_v7 = vadd.f32 %v2008_v54, %v2007_v33  ;;  %v2012_v47 = vmul.f32 %v1988_v57, %v3882_v52  ;;  %v1997_v41 = vadd.f32 %v1988_v57, %v1987_v5  ;;  %v1989_v9 = vmul.f32 %v3494_v38, %v3883_v18  ;;  %1830 = vadd.xlane.f32.xlu1 %v1829_v59 }
 0x31e   : > { %v1970_v44 = vadd.f32 %v1960_v31, %v1959_v15  ;;  %v1990_v51 = vmul.f32 %v3502_v4, %v3884_v62  ;;  %v1845_v8 = vmul.f32 %v3485_v49, %v3002_v2  ;;  %v1846_v17 = vmul.f32 %v3498_v39, %v3004_v53 }
 0x31f   : > { %v2021_v35 = vadd.f32 %v2012_v47, %v2011_v26  ;;  %v1847_v10 = vmul.f32 %v3505_v29, %v3147_v25  ;;  %v1848_v43 = vmul.f32 %v3508_v0, %v3150_v34  ;;  %v1899_v38 = vmul.f32 %v3461_v13, %v3131_v21  ;;  %1944 = vadd.xlane.f32.xlu0 %v1943_v3  ;;  %v3891_v3 = vld [vmem:[#allocation29_spill] sm:$0xff] }
 0x320   : > { %v2000_v59 = vadd.f32 %v1990_v51, %v1989_v9  ;;  %v1853_v24 = vadd.f32 %v1846_v17, %v1845_v8  ;;  %v1900_v4 = vmul.f32 %v3473_v46, %v3134_v6  ;;  %v1901_v2 = vmul.f32 %v1877_v45, %v3865_v36  ;;  %v3885_v36 = vld [vmem:[#allocation30_spill] sm:$0xff] }
 0x321   : > { %v1856_v49 = vadd.f32 %v1848_v43, %v1847_v10  ;;  %v1902_v53 = vmul.f32 %v1878_v11, %v3866_v60  ;;  %v1849_v39 = vmul.f32 %v1825_v28, %v3871_v1  ;;  %v1850_v25 = vmul.f32 %v1826_v12, %v3872_v56  ;;  %1833 = vadd.xlane.f32.xlu1 %v3532_v32  ;;  %v3886_v32 = vld [vmem:[#allocation21_spill] sm:$0xff]  ;;  %v3893_v56 = vld [vmem:[#allocation26_spill] sm:$0xff] }
 0x322   : > { %v1907_v34 = vadd.f32 %v1900_v4, %v1899_v38  ;;  %v1903_v21 = vmul.f32 %v1879_v22, %v3873_v30  ;;  %v1904_v13 = vmul.f32 %v1880_v20, %v3874_v27  ;;  %v1953_v29 = vmul.f32 %v3466_v48, %v3218_v19  ;;  %v3887_v60 = vld [vmem:[#allocation37_spill] sm:$0xff]  ;;  %v3889_v22 = vld [vmem:[#allocation36_spill] sm:$0xff]  ;;  %v3890_v27 = vld [vmem:[#allocation34_spill] sm:$0xff] }
 0x323   : > { %v1910_v6 = vadd.f32 %v1902_v53, %v1901_v2  ;;  %v1859_v46 = vadd.f32 %v1850_v25, %v1849_v39  ;;  %v1954_v0 = vmul.f32 %v3478_v58, %v3221_v40  ;;  %v1851_v47 = vmul.f32 %v3515_v63, %v3862_v42  ;;  %1995 = vadd.xlane.f32.xlu0 %v3885_v36  ;;  %v3888_v30 = vld [vmem:[#allocation33_spill] sm:$0xff]  ;;  %v3894_v12 = vld [vmem:[#allocation38_spill] sm:$0xff] }
 0x324   : > { %v1913_v45 = vadd.f32 %v1904_v13, %v1903_v21  ;;  %v1852_v11 = vmul.f32 %v3887_v60, %v3886_v32  ;;  %v2009_v20 = vmul.f32 %v3889_v22, %v3888_v30  ;;  %v2010_v19 = vmul.f32 %v3891_v3, %v3890_v27  ;;  %v3892_v58 = vld [vmem:[#allocation25_spill] sm:$0xff] }
 0x325   : > { %v1961_v48 = vadd.f32 %v1954_v0, %v1953_v29  ;;  %v2013_v1 = vmul.f32 %v1989_v9, %v3883_v18  ;;  %v2014_v40 = vmul.f32 %v1990_v51, %v3884_v62  ;;  %1887 = vadd.xlane.f32.xlu1 %v3892_v58 }
 0x326   : > { %v1862_v42 = vadd.f32 %v1852_v11, %v1851_v47  ;;  %v2018_v63 = vadd.f32 %v2010_v19, %v2009_v20 }
 0x327   : > { %v2024_v28 = vadd.f32 %v2014_v40, %v2013_v1  ;;  %1965 = vadd.xlane.f32.xlu0 %v1964_v23 }
 0x329   : > { %1836 = vadd.xlane.f32.xlu1 %v3558_v50 }
 0x32b   : > { %1917 = vadd.xlane.f32.xlu0 %v3893_v56 }
 0x32d   : > { %1890 = vadd.xlane.f32.xlu1 %v1889_v61 }
 0x32f   : > { %1968 = vadd.xlane.f32.xlu0 %v1967_v14 }
 0x331   : > { %1941 = vadd.xlane.f32.xlu1 %v3894_v12 }
 0x333   : > { %2016 = vadd.xlane.f32.xlu0 %v2015_v7 }
 0x335   : > { %1992 = vadd.xlane.f32.xlu1 %v1991_v16 }
 0x337   : > { %1971 = vadd.xlane.f32.xlu0 %v1970_v44 }
 0x339   : > { %1947 = vadd.xlane.f32.xlu1 %v1946_v37 }
 0x33b   : > { %2022 = vadd.xlane.f32.xlu0 %v2021_v35 }
 0x33d   : > { %1998 = vadd.xlane.f32.xlu1 %v1997_v41 }
 0x341   : > { %2001 = vadd.xlane.f32.xlu1 %v2000_v59 }
 0x345   : > { %1854 = vadd.xlane.f32.xlu1 %v1853_v24 }
 0x349   : > { %1857 = vadd.xlane.f32.xlu1 %v1856_v49 }
 0x34d   : > { %1908 = vadd.xlane.f32.xlu1 %v1907_v34 }
 0x351   : > { %1911 = vadd.xlane.f32.xlu1 %v1910_v6 }
 0x355   : > { %1860 = vadd.xlane.f32.xlu1 %v1859_v46 }
 0x359   : > { %1914 = vadd.xlane.f32.xlu1 %v1913_v45 }
 0x35d   : > { %1962 = vadd.xlane.f32.xlu1 %v1961_v48 }
 0x361   : > { %1863 = vadd.xlane.f32.xlu1 %v1862_v42 }
 0x365   : > { %2019 = vadd.xlane.f32.xlu1 %v2018_v63 }
 0x369   : > { %2025 = vadd.xlane.f32.xlu1 %v2024_v28 }
 0x396   : > { %v1806_v14 = vpop.xlane.xlu1 %1805 }
 0x398   : > { %v1885_v16 = vpop.xlane.xlu0 %1884 }
 0x39a   : > { %v1809_v50 = vpop.xlane.xlu1 %1808 }
 0x39b   : > { %v1816_v61 = vadd.f32 %v1809_v50, %v1806_v14 }
 0x39c   : > { %v1939_v57 = vpop.xlane.xlu0 %1938 }
 0x39e   : > { %v1812_v23 = vpop.xlane.xlu1 %1811 }
 0x39f   : > { %v1817_v55 = vadd.f32 %v1816_v61, %v1812_v23 }
 0x3a0   : > { %v1840_v7 = vpop.xlane.xlu0 %1839 }
 0x3a2   : > { %v1815_v5 = vpop.xlane.xlu1 %1814 }
 0x3a3   : > { %v1818_v33 = vadd.f32 %v1817_v55, %v1815_v5 }
 0x3a4   : > { %v1894_v17 = vpop.xlane.xlu0 %1893 }
 0x3a5   : > { %v3623_v54 = vadd.f32 1e-06, %v1818_v33 }
 0x3a6   : > { %v1831_v41 = vpop.xlane.xlu1 %1830 }
 0x3a7   : > { %2220 = vrcp.f32 %v3623_v54 }
 0x3a8   : > { %v1945_v10 = vpop.xlane.xlu0 %1944 }
 0x3aa   : > { %v1834_v52 = vpop.xlane.xlu1 %1833 }
 0x3ab   : > { %v1841_v31 = vadd.f32 %v1834_v52, %v1831_v41 }
 0x3ac   : > { %v1996_v59 = vpop.xlane.xlu0 %1995 }
 0x3ae   : > { %v1888_v15 = vpop.xlane.xlu1 %1887 }
 0x3af   : > { %v1895_v39 = vadd.f32 %v1888_v15, %v1885_v16 }
 0x3b0   : > { %v1966_v4 = vpop.xlane.xlu0 %1965 }
 0x3b2   : > { %v1837_v37 = vpop.xlane.xlu1 %1836 }
 0x3b3   : > { %v1842_v26 = vadd.f32 %v1841_v31, %v1837_v37 }
 0x3b4   : > { %v3626_v9 = vpop.eup %2220  ;;  %v1918_v53 = vpop.xlane.xlu0 %1917 }
 0x3b5   : > { %v1843_v18 = vadd.f32 %v1842_v26, %v1840_v7 }
 0x3b6   : > { %v1891_v44 = vpop.xlane.xlu1 %1890 }
 0x3b7   : > { %v1844_v62 = vmul.f32 %v3626_v9, %v1843_v18  ;;  %v1896_v34 = vadd.f32 %v1895_v39, %v1891_v44  ;;  %v3895_v39 = vld [vmem:[#allocation5_spill] sm:$0xff] }
 0x3b8   : > { %v1969_v21 = vpop.xlane.xlu0 %1968 }
 0x3b9   : > { %v1897_v6 = vadd.f32 %v1896_v34, %v1894_v17  ;;  %v1869_v14 = vmul.f32 %v1844_v62, %v1844_v62 }
 0x3ba   : > { %v1942_v51 = vpop.xlane.xlu1 %1941 }
 0x3bb   : > { %v1949_v29 = vadd.f32 %v1942_v51, %v1939_v57  ;;  %v1898_v45 = vmul.f32 %v3626_v9, %v1897_v6 }
 0x3bc   : > { %v2017_v32 = vpop.xlane.xlu0 %2016 }
 0x3bd   : > { %v1950_v47 = vadd.f32 %v1949_v29, %v1945_v10  ;;  %v1923_v3 = vmul.f32 %v1898_v45, %v1898_v45 }
 0x3be   : > { %v1993_v8 = vpop.xlane.xlu1 %1992 }
 0x3bf   : > { %v2003_v19 = vadd.f32 %v1996_v59, %v1993_v8 }
 0x3c0   : > { %v1972_v58 = vpop.xlane.xlu0 %1971 }
 0x3c2   : > { %v1948_v35 = vpop.xlane.xlu1 %1947 }
 0x3c3   : > { %v1951_v60 = vadd.f32 %v1950_v47, %v1948_v35 }
 0x3c4   : > { %v2023_v57 = vpop.xlane.xlu0 %2022 }
 0x3c5   : > { %v1952_v48 = vmul.f32 %v3626_v9, %v1951_v60 }
 0x3c6   : > { %v1999_v43 = vpop.xlane.xlu1 %1998 }
 0x3c7   : > { %v2004_v28 = vadd.f32 %v2003_v19, %v1999_v43  ;;  %v1977_v50 = vmul.f32 %v1952_v48, %v1952_v48 }
 0x3ca   : > { %v2002_v38 = vpop.xlane.xlu1 %2001 }
 0x3cb   : > { %v2005_v23 = vadd.f32 %v2004_v28, %v2002_v38 }
 0x3cd   : > { %v2006_v15 = vmul.f32 %v3626_v9, %v2005_v23 }
 0x3ce   : > { %v1855_v24 = vpop.xlane.xlu1 %1854 }
 0x3cf   : > { %v2031_v44 = vmul.f32 %v2006_v15, %v2006_v15 }
 0x3d2   : > { %v1858_v2 = vpop.xlane.xlu1 %1857 }
 0x3d3   : > { %v1865_v22 = vadd.f32 %v1858_v2, %v1855_v24 }
 0x3d6   : > { %v1909_v49 = vpop.xlane.xlu1 %1908 }
 0x3da   : > { %v1912_v25 = vpop.xlane.xlu1 %1911 }
 0x3db   : > { %v1919_v46 = vadd.f32 %v1912_v25, %v1909_v49 }
 0x3de   : > { %v1861_v13 = vpop.xlane.xlu1 %1860 }
 0x3df   : > { %v1866_v1 = vadd.f32 %v1865_v22, %v1861_v13 }
 0x3e2   : > { %v1915_v0 = vpop.xlane.xlu1 %1914 }
 0x3e3   : > { %v1920_v36 = vadd.f32 %v1919_v46, %v1915_v0 }
 0x3e5   : > { %v1921_v11 = vadd.f32 %v1920_v36, %v1918_v53 }
 0x3e6   : > { %v1963_v30 = vpop.xlane.xlu1 %1962 }
 0x3e7   : > { %v1922_v20 = vmul.f32 %v3626_v9, %v1921_v11  ;;  %v1973_v27 = vadd.f32 %v1966_v4, %v1963_v30 }
 0x3e9   : > { %v1974_v40 = vadd.f32 %v1973_v27, %v1969_v21  ;;  %v1924_v42 = vsub.f32 %v1922_v20, %v1923_v3 }
 0x3ea   : > { %v1864_v63 = vpop.xlane.xlu1 %1863 }
 0x3eb   : > { %v1975_v56 = vadd.f32 %v1974_v40, %v1972_v58  ;;  %v1867_v12 = vadd.f32 %v1866_v1, %v1864_v63  ;;  %v1925_v5 = vadd.f32 1e-06, %v1924_v42 }
 0x3ed   : > { %v1976_v61 = vmul.f32 %v3626_v9, %v1975_v56  ;;  %v1868_v55 = vmul.f32 %v3626_v9, %v1867_v12  ;;  %2222 = vlog2.f32 %v1925_v5 }
 0x3ee   : > { %v2020_v33 = vpop.xlane.xlu1 %2019 }
 0x3ef   : > { %v1978_v41 = vsub.f32 %v1976_v61, %v1977_v50  ;;  %v1870_v16 = vsub.f32 %v1868_v55, %v1869_v14  ;;  %v2027_v52 = vadd.f32 %v2020_v33, %v2017_v32 }
 0x3f1   : > { %v1979_v31 = vadd.f32 1e-06, %v1978_v41  ;;  %v1871_v37 = vadd.f32 1e-06, %v1870_v16  ;;  %v2028_v26 = vadd.f32 %v2027_v52, %v2023_v57 }
 0x3f2   : > { %v2026_v7 = vpop.xlane.xlu1 %2025 }
 0x3f3   : > { %2224 = vlog2.f32 %v1979_v31  ;;  %v2029_v18 = vadd.f32 %v2028_v26, %v2026_v7 }
 0x3f4   : > { %2226 = vlog2.f32 %v1871_v37 }
 0x3f5   : > { %v2030_v62 = vmul.f32 %v3626_v9, %v2029_v18  ;;  %v3896_v9 = vld [vmem:[#allocation6_spill] sm:$0xff] }
 0x3f7   : > { %v2032_v51 = vsub.f32 %v2030_v62, %v2031_v44 }
 0x3f9   : > { %v2033_v8 = vadd.f32 1e-06, %v2032_v51 }
 0x3fa   : > { %v2223_v17 = vpop.eup %2222 }
 0x3fb   : > { %2228 = vlog2.f32 %v2033_v8  ;;  %v1927_v43 = vmul.f32 0.6931472, %v2223_v17 }
 0x400   : > { %v2225_v35 = vpop.eup %2224 }
 0x401   : > { %v2227_v10 = vpop.eup %2226  ;;  %v1981_v59 = vmul.f32 0.6931472, %v2225_v35 }
 0x402   : > { %v1873_v38 = vmul.f32 0.6931472, %v2227_v10 }
 0x404   : > { %v1928_v24 = vadd.f32 %v1927_v43, %v1873_v38 }
 0x406   : > { %v1982_v4 = vadd.f32 %v1981_v59, %v1928_v24 }
 0x408   : > { %v2229_v2 = vpop.eup %2228 }
 0x409   : > { %v2035_v49 = vmul.f32 0.6931472, %v2229_v2 }
 0x40b   : > { %v2036_v53 = vadd.f32 %v2035_v49, %v1982_v4 }
 0x40d   : > { %v2037_v25 = vadd.f32 %v2036_v53, %v3895_v39 }
 0x40f   : > { %v2038_v34 = vmul.f32 %v2037_v25, %v3623_v54 }
 0x411   : > { %v2039_v21 = vsub.f32 %v3896_v9, %v2038_v34 }
 0x413   : > { %v2124_v13 = vmul.f32 -0.01, %v2039_v21 }
 0x415   : > { %v2042_v29 = vmul.f32 1.442695, %v2124_v13 }
 0x417   : > { %2230 = vpow2.f32 %v2042_v29 }
 0x424   : > { %v2231_v6 = vpop.eup %2230 }
 0x425   : > { %v2044_v46 = vadd.f32 1.0, %v2231_v6 }
 0x427   : > { %2232 = vrcp.f32 %v2044_v46 }
 0x434   : > { %v2233_v0 = vpop.eup %2232 }
 0x435   : > { %2048 = vst.msk [vmem:[%s266_s13] sm:$0xff] %vm2047_vm0, %v2233_v0 }
 0x436 PF: > { %s16_s21 = sadd.s32 1, %s2240_s21  }
 0x437   : > { %p13_p4 = scmp.ge.s32.totalorder %s16_s21, 4  }
 0x439   :  { %15 = sbr.rel (!%p13_p4) target bundleno = 1 (0x1), region = 77 }

</bundles_post_ra>
